<compile_context>
chip_gen: v7x
topology: tpu7x:2x2x1
jax: 0.10.0
libtpu: 0.0.40
codegen_flags: <defaults>
</compile_context>

<pallas_src>
import functools

import jax
import jax.numpy as jnp
import numpy as np
from jax import lax
from jax.experimental import pallas as pl
from jax.experimental.pallas import tpu as pltpu


def _gilr_kernel(x_ref, win_ref, bin_ref, gamma_ref, beta_ref, wout_ref, bout_ref,
                 out_ref, vh_sc, g_sc, hc_sc, *, eps):
    """One (TB batch rows x CL timesteps) block; x block layout is (TB, CL, D)."""
    TB, CL, D = x_ref.shape
    M = TB * CL
    l_idx = pl.program_id(1)

    # h carry persists across L-chunks; zero it at the first chunk of each batch block.
    @pl.when(l_idx == 0)
    def _():
        hc_sc[...] = jnp.zeros_like(hc_sc)

    # ---- in_proj: one (M, 3D) MXU pass (bf16 operands, f32 accumulation) ----
    x2 = x_ref[...].reshape(M, D)                                   # bf16
    u = jnp.dot(x2, win_ref[...], preferred_element_type=jnp.float32) + bin_ref[...]
    v = u[:, 0 * D:1 * D]
    o = u[:, 1 * D:2 * D]
    f = u[:, 2 * D:3 * D]

    so = o * jax.nn.sigmoid(o)                                      # SiLU(o), f32, (tb, l) row order

    # Reorder v and g into time-major (CL, TB, D) scratch for the scan
    # (in-VMEM major-dim swap; lane dim D untouched).
    vh_sc[...] = pltpu.einshape("btd->tbd", v.reshape(TB, CL, D))
    g_sc[...] = pltpu.einshape("btd->tbd",
                               jax.nn.sigmoid(f).reshape(TB, CL, D)).astype(jnp.bfloat16)

    # ---- linear recurrence over the chunk; h carried in vregs ---------------
    def step(t, h):
        gt = g_sc[t].astype(jnp.float32)                            # (TB, D)
        h = gt * h + (1.0 - gt) * vh_sc[t]
        vh_sc[t] = h
        return h

    unroll = 8 if CL % 8 == 0 else (4 if CL % 4 == 0 else (2 if CL % 2 == 0 else 1))
    h_last = lax.fori_loop(0, CL, step, hc_sc[...], unroll=unroll)
    hc_sc[...] = h_last                                             # carry to next L-chunk

    # ---- gate + fused-stats LayerNorm (f32) + out_proj (bf16 MXU) ------------
    h_all = pltpu.einshape("tbd->btd", vh_sc[...]).reshape(M, D)    # back to (tb, l) order
    y = h_all * so
    inv_d = 1.0 / D
    mean = jnp.sum(y, axis=-1, keepdims=True) * inv_d
    var = jnp.sum(y * y, axis=-1, keepdims=True) * inv_d - mean * mean
    yn = (y - mean) * lax.rsqrt(var + eps)
    yn = yn * gamma_ref[...] + beta_ref[...]

    out = jnp.dot(yn.astype(jnp.bfloat16), wout_ref[...],
                  preferred_element_type=jnp.float32) + bout_ref[...]
    out_ref[...] = out.reshape(TB, CL, D).astype(out_ref.dtype)


def _vmem_capacity_bytes():
    try:
        info = pltpu.get_tpu_info()
        cap = getattr(info, "vmem_capacity_bytes", None)
        if cap:
            return int(cap)
    except Exception:
        pass
    return 128 << 20  # v5e/v6e default


def _choose_tiles(B, L, D, budget_bytes):
    # Rough per-(tb, l)-row resident bytes inside one grid step:
    #   x block (bf16 x2 buf) 4D + out block (f32 x2 buf) 8D + vh scratch 4D +
    #   g scratch 2D + compiler temps (u, so, reorders, y, yn, out) ~ 34D.
    bytes_per_row = 52 * D
    const_bytes = 16 * D * D + 64 * D + (1 << 16)   # W_in/W_out bf16 (worst-case x2 buf) + biases
    avail = max(budget_bytes - const_bytes, 1 << 20)
    max_rows = int(min(max(avail // bytes_per_row, 8), 4096))

    # Batch tile: fill >= 8 f32 sublanes when B allows; grow while the row budget allows.
    TB = max(1, min(B, 8))
    while TB * 2 <= min(B, 64) and TB * 2 * min(L, 256) <= max_rows:
        TB *= 2

    # v7x megacore: prefer >= 2 steps on the parallel batch axis unless it would
    # drop TB below a full sublane tile.
    if -(-B // TB) < 2 and TB >= 16:
        TB //= 2

    # Sequence chunk: largest divisor of L whose block fits the row budget.
    CL = 1
    for c in range(min(L, max(1, max_rows // TB)), 0, -1):
        if L % c == 0:
            CL = c
            break
    return TB, CL


def _build_call(TB, CL, D, B_pad, L, out_dtype, vmem_limit, single_buffer_consts, eps):
    def const_spec(shape):
        if single_buffer_consts:
            return pl.BlockSpec(shape, lambda b, l: (0,) * len(shape),
                                pipeline_mode=pl.Buffered(1))
        return pl.BlockSpec(shape, lambda b, l: (0,) * len(shape))

    kernel = functools.partial(_gilr_kernel, eps=eps)
    return pl.pallas_call(
        kernel,
        out_shape=jax.ShapeDtypeStruct((B_pad, L, D), out_dtype),
        grid_spec=pltpu.PrefetchScalarGridSpec(
            num_scalar_prefetch=0,
            grid=(B_pad // TB, L // CL),
            in_specs=[
                pl.BlockSpec((TB, CL, D), lambda b, l: (b, l, 0)),   # x (bf16)
                const_spec((D, 3 * D)),                              # W_in^T (bf16)
                const_spec((1, 3 * D)),                              # b_in
                const_spec((1, D)),                                  # ln gamma
                const_spec((1, D)),                                  # ln beta
                const_spec((D, D)),                                  # W_out^T (bf16)
                const_spec((1, D)),                                  # b_out
            ],
            out_specs=pl.BlockSpec((TB, CL, D), lambda b, l: (b, l, 0)),
            scratch_shapes=[
                pltpu.VMEM((CL, TB, D), jnp.float32),    # v -> scanned h (in place), time-major
                pltpu.VMEM((CL, TB, D), jnp.bfloat16),   # sigmoid(f), time-major
                pltpu.VMEM((TB, D), jnp.float32),        # h carry across L-chunks
            ],
        ),
        compiler_params=pltpu.CompilerParams(
            dimension_semantics=("parallel", "arbitrary"),
            vmem_limit_bytes=vmem_limit,
        ),
    )


def gilr_layer(x, params, *, eps=1e-5):
    """x: (B, L, D). params: dict of transposed / row-vector weights (see init_params)."""
    B, L, D = x.shape
    budget = int(0.80 * _vmem_capacity_bytes())      # generation-aware VMEM budget
    TB, CL = _choose_tiles(B, L, D, budget)

    # Pad batch to a multiple of TB (padded rows are garbage and sliced off).
    B_pad = -(-B // TB) * TB
    xb = x.astype(jnp.bfloat16)                      # halve x HBM->VMEM bytes
    if B_pad != B:
        xb = jnp.pad(xb, ((0, B_pad - B), (0, 0), (0, 0)))

    win = params["win_t"].astype(jnp.bfloat16)       # (D, 3D)
    wout = params["wout_t"].astype(jnp.bfloat16)     # (D, D)
    args = (xb, win, params["bin"], params["gamma"], params["beta"], wout, params["bout"])

    try:
        out = _build_call(TB, CL, D, B_pad, L, x.dtype, budget, True, eps)(*args)
        out = jax.block_until_ready(out)
    except Exception:
        # pl.Buffered(1) single-buffering of the constant blocks may be unsupported
        # on this jax version; retry with default (double-buffered) constant specs.
        out = _build_call(TB, CL, D, B_pad, L, x.dtype, budget, False, eps)(*args)

    return out[:B]


def gilr_layer_ref(x, params, *, eps=1e-5):
    """Pure-JAX reference mirroring the kernel's numerics (bf16 MXU, bf16 gate scratch)."""
    D = params["gamma"].shape[-1]
    xb = x.astype(jnp.bfloat16)
    u = jnp.dot(xb, params["win_t"].astype(jnp.bfloat16),
                preferred_element_type=jnp.float32) + params["bin"]
    v, o, f = u[..., :D], u[..., D:2 * D], u[..., 2 * D:]
    # Kernel stores sigmoid(f) in bf16 scratch; mirror that rounding.
    g = jax.nn.sigmoid(f).astype(jnp.bfloat16).astype(jnp.float32)

    def scan_one(v_seq, g_seq):
        def step(h, inputs):
            g_t, v_t = inputs
            h = g_t * h + (1.0 - g_t) * v_t
            return h, h
        _, hs = lax.scan(step, jnp.zeros((D,), jnp.float32), (g_seq, v_seq))
        return hs

    h = jax.vmap(scan_one)(v, g)                     # (B, L, D)
    y = h * (o * jax.nn.sigmoid(o))
    mean = jnp.mean(y, axis=-1, keepdims=True)
    var = jnp.mean((y - mean) ** 2, axis=-1, keepdims=True)
    yn = (y - mean) * lax.rsqrt(var + eps)
    yn = yn * params["gamma"] + params["beta"]
    out = jnp.dot(yn.astype(jnp.bfloat16), params["wout_t"].astype(jnp.bfloat16),
                  preferred_element_type=jnp.float32) + params["bout"]
    return out.astype(x.dtype)


def init_params(key, d_model):
    """Deterministic init matching nn.Linear / nn.LayerNorm shapes (factor=1)."""
    k1, k2, k3, k4 = jax.random.split(key, 4)
    s_in = 1.0 / np.sqrt(d_model)
    # in_proj.weight: (3*d_model, d_model) -> stored transposed (d_model, 3*d_model)
    win_t = jax.random.uniform(k1, (d_model, 3 * d_model), jnp.float32, -s_in, s_in)
    bin_ = jax.random.uniform(k2, (1, 3 * d_model), jnp.float32, -s_in, s_in)
    gamma = jnp.ones((1, d_model), jnp.float32)
    beta = jnp.zeros((1, d_model), jnp.float32)
    # out_proj.weight: (d_model, d_model) -> stored transposed
    wout_t = jax.random.uniform(k3, (d_model, d_model), jnp.float32, -s_in, s_in)
    bout = jax.random.uniform(k4, (1, d_model), jnp.float32, -s_in, s_in)
    return dict(win_t=win_t, bin=bin_, gamma=gamma, beta=beta, wout_t=wout_t, bout=bout)


if __name__ == "__main__":
    B, L, D = 2, 8, 32  # batch, seq, d_model (factor=1)
    key = jax.random.PRNGKey(0)
    kx, kp = jax.random.split(key)
    x = jax.random.normal(kx, (B, L, D), jnp.float32)
    params = init_params(kp, D)

    out = gilr_layer(x, params)
    out = jax.block_until_ready(out)

    ref = gilr_layer_ref(x, params)
    np.testing.assert_allclose(np.asarray(out), np.asarray(ref), rtol=2e-3, atol=2e-3)

    print("KERNEL_OK")
</pallas_src>

<mosaic_0001>
module attributes {stable_mosaic.version = 11 : i64} {
  func.func @_gilr_kernel(%arg0: i32, %arg1: i32, %arg2: memref<2x8x32xbf16, #tpu.memory_space<vmem>>, %arg3: memref<32x96xbf16, #tpu.memory_space<vmem>>, %arg4: memref<1x96xf32, #tpu.memory_space<vmem>>, %arg5: memref<1x32xf32, #tpu.memory_space<vmem>>, %arg6: memref<1x32xf32, #tpu.memory_space<vmem>>, %arg7: memref<32x32xbf16, #tpu.memory_space<vmem>>, %arg8: memref<1x32xf32, #tpu.memory_space<vmem>>, %arg9: memref<2x8x32xf32, #tpu.memory_space<vmem>>, %arg10: memref<8x2x32xf32, #tpu.memory_space<vmem>>, %arg11: memref<8x2x32xbf16, #tpu.memory_space<vmem>>, %arg12: memref<2x32xf32, #tpu.memory_space<vmem>>) attributes {dimension_semantics = [#tpu.dimension_semantics<parallel>, #tpu.dimension_semantics<arbitrary>], iteration_bounds = array<i64: 1, 1>, scalar_prefetch = 0 : i64, scratch_operands = 3 : i64, tpu.core_type = #tpu.core_type<tc>, window_params = [{transform_indices = @transform_0, window_bounds = array<i64: 2, 8, 32>}, {pipeline_mode = #tpu.pipeline_mode<synchronous>, transform_indices = @transform_1, window_bounds = array<i64: 32, 96>}, {pipeline_mode = #tpu.pipeline_mode<synchronous>, transform_indices = @transform_2, window_bounds = array<i64: 1, 96>}, {pipeline_mode = #tpu.pipeline_mode<synchronous>, transform_indices = @transform_3, window_bounds = array<i64: 1, 32>}, {pipeline_mode = #tpu.pipeline_mode<synchronous>, transform_indices = @transform_4, window_bounds = array<i64: 1, 32>}, {pipeline_mode = #tpu.pipeline_mode<synchronous>, transform_indices = @transform_5, window_bounds = array<i64: 32, 32>}, {pipeline_mode = #tpu.pipeline_mode<synchronous>, transform_indices = @transform_6, window_bounds = array<i64: 1, 32>}, {transform_indices = @transform_7, window_bounds = array<i64: 2, 8, 32>}]} {
    %c0_i32 = arith.constant 0 : i32
    %0 = arith.cmpi eq, %arg1, %c0_i32 : i32
    %1 = arith.extui %0 : i1 to i32
    %c0_i32_0 = arith.constant 0 : i32
    %2 = arith.cmpi ne, %1, %c0_i32_0 : i32
    scf.if %2 {
      %cst_96 = arith.constant 0.000000e+00 : f32
      %197 = vector.broadcast %cst_96 : f32 to vector<2x32xf32>
      %c0_97 = arith.constant 0 : index
      %c0_98 = arith.constant 0 : index
      %198 = vector.load %arg12[%c0_97, %c0_98] : memref<2x32xf32, #tpu.memory_space<vmem>>, vector<2x32xf32>
      tpu.vector_store %arg12[%c0_97, %c0_98], %197 {strides = array<i32>} : memref<2x32xf32, #tpu.memory_space<vmem>>, vector<2x32xf32>,
    } else {
    }
    %c0 = arith.constant 0 : index
    %c0_1 = arith.constant 0 : index
    %c0_2 = arith.constant 0 : index
    %3 = vector.load %arg2[%c0, %c0_1, %c0_2] : memref<2x8x32xbf16, #tpu.memory_space<vmem>>, vector<2x8x32xbf16>
    %4 = vector.shape_cast %3 : vector<2x8x32xbf16> to vector<16x32xbf16>
    %c0_3 = arith.constant 0 : index
    %c0_4 = arith.constant 0 : index
    %5 = vector.load %arg3[%c0_3, %c0_4] : memref<32x96xbf16, #tpu.memory_space<vmem>>, vector<32x96xbf16>
    %cst = arith.constant dense<0.000000e+00> : vector<16x96xf32>
    %6 = tpu.matmul %4, %5, %cst {dimension_numbers = #tpu.dot_dimension_numbers<[1], [0], [0], [1], [0, 0, 1, 1], [], []>} : vector<16x32xbf16>, vector<32x96xbf16>, vector<16x96xf32> -> vector<16x96xf32>
    %c0_5 = arith.constant 0 : index
    %c0_6 = arith.constant 0 : index
    %7 = vector.load %arg4[%c0_5, %c0_6] : memref<1x96xf32, #tpu.memory_space<vmem>>, vector<1x96xf32>
    %8 = vector.broadcast %7 : vector<1x96xf32> to vector<16x96xf32>
    %9 = arith.addf %6, %8 : vector<16x96xf32>
    %10 = vector.extract_strided_slice %9 {offsets = [0, 0], sizes = [16, 32], strides = [1, 1]} : vector<16x96xf32> to vector<16x32xf32>
    %11 = vector.extract_strided_slice %9 {offsets = [0, 32], sizes = [16, 32], strides = [1, 1]} : vector<16x96xf32> to vector<16x32xf32>
    %12 = vector.extract_strided_slice %9 {offsets = [0, 64], sizes = [16, 32], strides = [1, 1]} : vector<16x96xf32> to vector<16x32xf32>
    %13 = arith.negf %11 : vector<16x32xf32>
    %14 = math.exp %13 : vector<16x32xf32>
    %cst_7 = arith.constant 1.000000e+00 : f32
    %15 = vector.broadcast %cst_7 : f32 to vector<16x32xf32>
    %16 = arith.addf %15, %14 : vector<16x32xf32>
    %17 = arith.divf %15, %16 : vector<16x32xf32>
    %18 = arith.mulf %11, %17 : vector<16x32xf32>
    %19 = vector.shape_cast %10 : vector<16x32xf32> to vector<2x8x32xf32>
    %20 = tpu.transpose %19, [1, 0, 2] : vector<2x8x32xf32> -> vector<8x2x32xf32>
    %c0_8 = arith.constant 0 : index
    %c0_9 = arith.constant 0 : index
    %c0_10 = arith.constant 0 : index
    %21 = vector.load %arg10[%c0_8, %c0_9, %c0_10] : memref<8x2x32xf32, #tpu.memory_space<vmem>>, vector<8x2x32xf32>
    tpu.vector_store %arg10[%c0_8, %c0_9, %c0_10], %20 {strides = array<i32>} : memref<8x2x32xf32, #tpu.memory_space<vmem>>, vector<8x2x32xf32>,
    %22 = arith.negf %12 : vector<16x32xf32>
    %23 = math.exp %22 : vector<16x32xf32>
    %cst_11 = arith.constant 1.000000e+00 : f32
    %24 = vector.broadcast %cst_11 : f32 to vector<16x32xf32>
    %25 = arith.addf %24, %23 : vector<16x32xf32>
    %26 = arith.divf %24, %25 : vector<16x32xf32>
    %27 = vector.shape_cast %26 : vector<16x32xf32> to vector<2x8x32xf32>
    %28 = tpu.transpose %27, [1, 0, 2] : vector<2x8x32xf32> -> vector<8x2x32xf32>
    %29 = arith.truncf %28 : vector<8x2x32xf32> to vector<8x2x32xbf16>
    %c0_12 = arith.constant 0 : index
    %c0_13 = arith.constant 0 : index
    %c0_14 = arith.constant 0 : index
    %30 = vector.load %arg11[%c0_12, %c0_13, %c0_14] : memref<8x2x32xbf16, #tpu.memory_space<vmem>>, vector<8x2x32xbf16>
    tpu.vector_store %arg11[%c0_12, %c0_13, %c0_14], %29 {strides = array<i32>} : memref<8x2x32xbf16, #tpu.memory_space<vmem>>, vector<8x2x32xbf16>,
    %c0_15 = arith.constant 0 : index
    %c0_16 = arith.constant 0 : index
    %31 = vector.load %arg12[%c0_15, %c0_16] : memref<2x32xf32, #tpu.memory_space<vmem>>, vector<2x32xf32>
    %c0_i32_17 = arith.constant 0 : i32
    %32 = arith.index_cast %c0_i32_17 : i32 to index
    %c0_18 = arith.constant 0 : index
    %c0_19 = arith.constant 0 : index
    %33 = vector.load %arg11[%32, %c0_18, %c0_19] : memref<8x2x32xbf16, #tpu.memory_space<vmem>>, vector<1x2x32xbf16>
    %34 = vector.shape_cast %33 : vector<1x2x32xbf16> to vector<2x32xbf16>
    %35 = arith.extf %34 : vector<2x32xbf16> to vector<2x32xf32>
    %36 = arith.mulf %35, %31 : vector<2x32xf32>
    %cst_20 = arith.constant 1.000000e+00 : f32
    %37 = vector.broadcast %cst_20 : f32 to vector<2x32xf32>
    %38 = arith.subf %37, %35 : vector<2x32xf32>
    %39 = arith.index_cast %c0_i32_17 : i32 to index
    %c0_21 = arith.constant 0 : index
    %c0_22 = arith.constant 0 : index
    %40 = vector.load %arg10[%39, %c0_21, %c0_22] : memref<8x2x32xf32, #tpu.memory_space<vmem>>, vector<1x2x32xf32>
    %41 = vector.shape_cast %40 : vector<1x2x32xf32> to vector<2x32xf32>
    %42 = arith.mulf %38, %41 : vector<2x32xf32>
    %43 = arith.addf %36, %42 : vector<2x32xf32>
    %44 = arith.index_cast %c0_i32_17 : i32 to index
    %c0_23 = arith.constant 0 : index
    %c0_24 = arith.constant 0 : index
    %45 = vector.load %arg10[%44, %c0_23, %c0_24] : memref<8x2x32xf32, #tpu.memory_space<vmem>>, vector<1x2x32xf32>
    %46 = vector.shape_cast %45 : vector<1x2x32xf32> to vector<2x32xf32>
    %47 = vector.shape_cast %43 : vector<2x32xf32> to vector<1x2x32xf32>
    tpu.vector_store %arg10[%44, %c0_23, %c0_24], %47 {strides = array<i32>} : memref<8x2x32xf32, #tpu.memory_space<vmem>>, vector<1x2x32xf32>,
    %c1_i32 = arith.constant 1 : i32
    %48 = arith.index_cast %c1_i32 : i32 to index
    %c0_25 = arith.constant 0 : index
    %c0_26 = arith.constant 0 : index
    %49 = vector.load %arg11[%48, %c0_25, %c0_26] : memref<8x2x32xbf16, #tpu.memory_space<vmem>>, vector<1x2x32xbf16>
    %50 = vector.shape_cast %49 : vector<1x2x32xbf16> to vector<2x32xbf16>
    %51 = arith.extf %50 : vector<2x32xbf16> to vector<2x32xf32>
    %52 = arith.mulf %51, %43 : vector<2x32xf32>
    %cst_27 = arith.constant 1.000000e+00 : f32
    %53 = vector.broadcast %cst_27 : f32 to vector<2x32xf32>
    %54 = arith.subf %53, %51 : vector<2x32xf32>
    %55 = arith.index_cast %c1_i32 : i32 to index
    %c0_28 = arith.constant 0 : index
    %c0_29 = arith.constant 0 : index
    %56 = vector.load %arg10[%55, %c0_28, %c0_29] : memref<8x2x32xf32, #tpu.memory_space<vmem>>, vector<1x2x32xf32>
    %57 = vector.shape_cast %56 : vector<1x2x32xf32> to vector<2x32xf32>
    %58 = arith.mulf %54, %57 : vector<2x32xf32>
    %59 = arith.addf %52, %58 : vector<2x32xf32>
    %60 = arith.index_cast %c1_i32 : i32 to index
    %c0_30 = arith.constant 0 : index
    %c0_31 = arith.constant 0 : index
    %61 = vector.load %arg10[%60, %c0_30, %c0_31] : memref<8x2x32xf32, #tpu.memory_space<vmem>>, vector<1x2x32xf32>
    %62 = vector.shape_cast %61 : vector<1x2x32xf32> to vector<2x32xf32>
    %63 = vector.shape_cast %59 : vector<2x32xf32> to vector<1x2x32xf32>
    tpu.vector_store %arg10[%60, %c0_30, %c0_31], %63 {strides = array<i32>} : memref<8x2x32xf32, #tpu.memory_space<vmem>>, vector<1x2x32xf32>,
    %c2_i32 = arith.constant 2 : i32
    %64 = arith.index_cast %c2_i32 : i32 to index
    %c0_32 = arith.constant 0 : index
    %c0_33 = arith.constant 0 : index
    %65 = vector.load %arg11[%64, %c0_32, %c0_33] : memref<8x2x32xbf16, #tpu.memory_space<vmem>>, vector<1x2x32xbf16>
    %66 = vector.shape_cast %65 : vector<1x2x32xbf16> to vector<2x32xbf16>
    %67 = arith.extf %66 : vector<2x32xbf16> to vector<2x32xf32>
    %68 = arith.mulf %67, %59 : vector<2x32xf32>
    %cst_34 = arith.constant 1.000000e+00 : f32
    %69 = vector.broadcast %cst_34 : f32 to vector<2x32xf32>
    %70 = arith.subf %69, %67 : vector<2x32xf32>
    %71 = arith.index_cast %c2_i32 : i32 to index
    %c0_35 = arith.constant 0 : index
    %c0_36 = arith.constant 0 : index
    %72 = vector.load %arg10[%71, %c0_35, %c0_36] : memref<8x2x32xf32, #tpu.memory_space<vmem>>, vector<1x2x32xf32>
    %73 = vector.shape_cast %72 : vector<1x2x32xf32> to vector<2x32xf32>
    %74 = arith.mulf %70, %73 : vector<2x32xf32>
    %75 = arith.addf %68, %74 : vector<2x32xf32>
    %76 = arith.index_cast %c2_i32 : i32 to index
    %c0_37 = arith.constant 0 : index
    %c0_38 = arith.constant 0 : index
    %77 = vector.load %arg10[%76, %c0_37, %c0_38] : memref<8x2x32xf32, #tpu.memory_space<vmem>>, vector<1x2x32xf32>
    %78 = vector.shape_cast %77 : vector<1x2x32xf32> to vector<2x32xf32>
    %79 = vector.shape_cast %75 : vector<2x32xf32> to vector<1x2x32xf32>
    tpu.vector_store %arg10[%76, %c0_37, %c0_38], %79 {strides = array<i32>} : memref<8x2x32xf32, #tpu.memory_space<vmem>>, vector<1x2x32xf32>,
    %c3_i32 = arith.constant 3 : i32
    %80 = arith.index_cast %c3_i32 : i32 to index
    %c0_39 = arith.constant 0 : index
    %c0_40 = arith.constant 0 : index
    %81 = vector.load %arg11[%80, %c0_39, %c0_40] : memref<8x2x32xbf16, #tpu.memory_space<vmem>>, vector<1x2x32xbf16>
    %82 = vector.shape_cast %81 : vector<1x2x32xbf16> to vector<2x32xbf16>
    %83 = arith.extf %82 : vector<2x32xbf16> to vector<2x32xf32>
    %84 = arith.mulf %83, %75 : vector<2x32xf32>
    %cst_41 = arith.constant 1.000000e+00 : f32
    %85 = vector.broadcast %cst_41 : f32 to vector<2x32xf32>
    %86 = arith.subf %85, %83 : vector<2x32xf32>
    %87 = arith.index_cast %c3_i32 : i32 to index
    %c0_42 = arith.constant 0 : index
    %c0_43 = arith.constant 0 : index
    %88 = vector.load %arg10[%87, %c0_42, %c0_43] : memref<8x2x32xf32, #tpu.memory_space<vmem>>, vector<1x2x32xf32>
    %89 = vector.shape_cast %88 : vector<1x2x32xf32> to vector<2x32xf32>
    %90 = arith.mulf %86, %89 : vector<2x32xf32>
    %91 = arith.addf %84, %90 : vector<2x32xf32>
    %92 = arith.index_cast %c3_i32 : i32 to index
    %c0_44 = arith.constant 0 : index
    %c0_45 = arith.constant 0 : index
    %93 = vector.load %arg10[%92, %c0_44, %c0_45] : memref<8x2x32xf32, #tpu.memory_space<vmem>>, vector<1x2x32xf32>
    %94 = vector.shape_cast %93 : vector<1x2x32xf32> to vector<2x32xf32>
    %95 = vector.shape_cast %91 : vector<2x32xf32> to vector<1x2x32xf32>
    tpu.vector_store %arg10[%92, %c0_44, %c0_45], %95 {strides = array<i32>} : memref<8x2x32xf32, #tpu.memory_space<vmem>>, vector<1x2x32xf32>,
    %c4_i32 = arith.constant 4 : i32
    %96 = arith.index_cast %c4_i32 : i32 to index
    %c0_46 = arith.constant 0 : index
    %c0_47 = arith.constant 0 : index
    %97 = vector.load %arg11[%96, %c0_46, %c0_47] : memref<8x2x32xbf16, #tpu.memory_space<vmem>>, vector<1x2x32xbf16>
    %98 = vector.shape_cast %97 : vector<1x2x32xbf16> to vector<2x32xbf16>
    %99 = arith.extf %98 : vector<2x32xbf16> to vector<2x32xf32>
    %100 = arith.mulf %99, %91 : vector<2x32xf32>
    %cst_48 = arith.constant 1.000000e+00 : f32
    %101 = vector.broadcast %cst_48 : f32 to vector<2x32xf32>
    %102 = arith.subf %101, %99 : vector<2x32xf32>
    %103 = arith.index_cast %c4_i32 : i32 to index
    %c0_49 = arith.constant 0 : index
    %c0_50 = arith.constant 0 : index
    %104 = vector.load %arg10[%103, %c0_49, %c0_50] : memref<8x2x32xf32, #tpu.memory_space<vmem>>, vector<1x2x32xf32>
    %105 = vector.shape_cast %104 : vector<1x2x32xf32> to vector<2x32xf32>
    %106 = arith.mulf %102, %105 : vector<2x32xf32>
    %107 = arith.addf %100, %106 : vector<2x32xf32>
    %108 = arith.index_cast %c4_i32 : i32 to index
    %c0_51 = arith.constant 0 : index
    %c0_52 = arith.constant 0 : index
    %109 = vector.load %arg10[%108, %c0_51, %c0_52] : memref<8x2x32xf32, #tpu.memory_space<vmem>>, vector<1x2x32xf32>
    %110 = vector.shape_cast %109 : vector<1x2x32xf32> to vector<2x32xf32>
    %111 = vector.shape_cast %107 : vector<2x32xf32> to vector<1x2x32xf32>
    tpu.vector_store %arg10[%108, %c0_51, %c0_52], %111 {strides = array<i32>} : memref<8x2x32xf32, #tpu.memory_space<vmem>>, vector<1x2x32xf32>,
    %c5_i32 = arith.constant 5 : i32
    %112 = arith.index_cast %c5_i32 : i32 to index
    %c0_53 = arith.constant 0 : index
    %c0_54 = arith.constant 0 : index
    %113 = vector.load %arg11[%112, %c0_53, %c0_54] : memref<8x2x32xbf16, #tpu.memory_space<vmem>>, vector<1x2x32xbf16>
    %114 = vector.shape_cast %113 : vector<1x2x32xbf16> to vector<2x32xbf16>
    %115 = arith.extf %114 : vector<2x32xbf16> to vector<2x32xf32>
    %116 = arith.mulf %115, %107 : vector<2x32xf32>
    %cst_55 = arith.constant 1.000000e+00 : f32
    %117 = vector.broadcast %cst_55 : f32 to vector<2x32xf32>
    %118 = arith.subf %117, %115 : vector<2x32xf32>
    %119 = arith.index_cast %c5_i32 : i32 to index
    %c0_56 = arith.constant 0 : index
    %c0_57 = arith.constant 0 : index
    %120 = vector.load %arg10[%119, %c0_56, %c0_57] : memref<8x2x32xf32, #tpu.memory_space<vmem>>, vector<1x2x32xf32>
    %121 = vector.shape_cast %120 : vector<1x2x32xf32> to vector<2x32xf32>
    %122 = arith.mulf %118, %121 : vector<2x32xf32>
    %123 = arith.addf %116, %122 : vector<2x32xf32>
    %124 = arith.index_cast %c5_i32 : i32 to index
    %c0_58 = arith.constant 0 : index
    %c0_59 = arith.constant 0 : index
    %125 = vector.load %arg10[%124, %c0_58, %c0_59] : memref<8x2x32xf32, #tpu.memory_space<vmem>>, vector<1x2x32xf32>
    %126 = vector.shape_cast %125 : vector<1x2x32xf32> to vector<2x32xf32>
    %127 = vector.shape_cast %123 : vector<2x32xf32> to vector<1x2x32xf32>
    tpu.vector_store %arg10[%124, %c0_58, %c0_59], %127 {strides = array<i32>} : memref<8x2x32xf32, #tpu.memory_space<vmem>>, vector<1x2x32xf32>,
    %c6_i32 = arith.constant 6 : i32
    %128 = arith.index_cast %c6_i32 : i32 to index
    %c0_60 = arith.constant 0 : index
    %c0_61 = arith.constant 0 : index
    %129 = vector.load %arg11[%128, %c0_60, %c0_61] : memref<8x2x32xbf16, #tpu.memory_space<vmem>>, vector<1x2x32xbf16>
    %130 = vector.shape_cast %129 : vector<1x2x32xbf16> to vector<2x32xbf16>
    %131 = arith.extf %130 : vector<2x32xbf16> to vector<2x32xf32>
    %132 = arith.mulf %131, %123 : vector<2x32xf32>
    %cst_62 = arith.constant 1.000000e+00 : f32
    %133 = vector.broadcast %cst_62 : f32 to vector<2x32xf32>
    %134 = arith.subf %133, %131 : vector<2x32xf32>
    %135 = arith.index_cast %c6_i32 : i32 to index
    %c0_63 = arith.constant 0 : index
    %c0_64 = arith.constant 0 : index
    %136 = vector.load %arg10[%135, %c0_63, %c0_64] : memref<8x2x32xf32, #tpu.memory_space<vmem>>, vector<1x2x32xf32>
    %137 = vector.shape_cast %136 : vector<1x2x32xf32> to vector<2x32xf32>
    %138 = arith.mulf %134, %137 : vector<2x32xf32>
    %139 = arith.addf %132, %138 : vector<2x32xf32>
    %140 = arith.index_cast %c6_i32 : i32 to index
    %c0_65 = arith.constant 0 : index
    %c0_66 = arith.constant 0 : index
    %141 = vector.load %arg10[%140, %c0_65, %c0_66] : memref<8x2x32xf32, #tpu.memory_space<vmem>>, vector<1x2x32xf32>
    %142 = vector.shape_cast %141 : vector<1x2x32xf32> to vector<2x32xf32>
    %143 = vector.shape_cast %139 : vector<2x32xf32> to vector<1x2x32xf32>
    tpu.vector_store %arg10[%140, %c0_65, %c0_66], %143 {strides = array<i32>} : memref<8x2x32xf32, #tpu.memory_space<vmem>>, vector<1x2x32xf32>,
    %c7_i32 = arith.constant 7 : i32
    %144 = arith.index_cast %c7_i32 : i32 to index
    %c0_67 = arith.constant 0 : index
    %c0_68 = arith.constant 0 : index
    %145 = vector.load %arg11[%144, %c0_67, %c0_68] : memref<8x2x32xbf16, #tpu.memory_space<vmem>>, vector<1x2x32xbf16>
    %146 = vector.shape_cast %145 : vector<1x2x32xbf16> to vector<2x32xbf16>
    %147 = arith.extf %146 : vector<2x32xbf16> to vector<2x32xf32>
    %148 = arith.mulf %147, %139 : vector<2x32xf32>
    %cst_69 = arith.constant 1.000000e+00 : f32
    %149 = vector.broadcast %cst_69 : f32 to vector<2x32xf32>
    %150 = arith.subf %149, %147 : vector<2x32xf32>
    %151 = arith.index_cast %c7_i32 : i32 to index
    %c0_70 = arith.constant 0 : index
    %c0_71 = arith.constant 0 : index
    %152 = vector.load %arg10[%151, %c0_70, %c0_71] : memref<8x2x32xf32, #tpu.memory_space<vmem>>, vector<1x2x32xf32>
    %153 = vector.shape_cast %152 : vector<1x2x32xf32> to vector<2x32xf32>
    %154 = arith.mulf %150, %153 : vector<2x32xf32>
    %155 = arith.addf %148, %154 : vector<2x32xf32>
    %156 = arith.index_cast %c7_i32 : i32 to index
    %c0_72 = arith.constant 0 : index
    %c0_73 = arith.constant 0 : index
    %157 = vector.load %arg10[%156, %c0_72, %c0_73] : memref<8x2x32xf32, #tpu.memory_space<vmem>>, vector<1x2x32xf32>
    %158 = vector.shape_cast %157 : vector<1x2x32xf32> to vector<2x32xf32>
    %159 = vector.shape_cast %155 : vector<2x32xf32> to vector<1x2x32xf32>
    tpu.vector_store %arg10[%156, %c0_72, %c0_73], %159 {strides = array<i32>} : memref<8x2x32xf32, #tpu.memory_space<vmem>>, vector<1x2x32xf32>,
    %c8_i32 = arith.constant 8 : i32
    %c0_74 = arith.constant 0 : index
    %c0_75 = arith.constant 0 : index
    %160 = vector.load %arg12[%c0_74, %c0_75] : memref<2x32xf32, #tpu.memory_space<vmem>>, vector<2x32xf32>
    tpu.vector_store %arg12[%c0_74, %c0_75], %155 {strides = array<i32>} : memref<2x32xf32, #tpu.memory_space<vmem>>, vector<2x32xf32>,
    %c0_76 = arith.constant 0 : index
    %c0_77 = arith.constant 0 : index
    %c0_78 = arith.constant 0 : index
    %161 = vector.load %arg10[%c0_76, %c0_77, %c0_78] : memref<8x2x32xf32, #tpu.memory_space<vmem>>, vector<8x2x32xf32>
    %162 = tpu.transpose %161, [1, 0, 2] : vector<8x2x32xf32> -> vector<2x8x32xf32>
    %163 = vector.shape_cast %162 : vector<2x8x32xf32> to vector<16x32xf32>
    %164 = arith.mulf %163, %18 : vector<16x32xf32>
    %cst_79 = arith.constant dense<0.000000e+00> : vector<16xf32>
    %165 = vector.multi_reduction <add>, %164, %cst_79 [1] : vector<16x32xf32> to vector<16xf32>
    %166 = vector.shape_cast %165 : vector<16xf32> to vector<16x1xf32>
    %cst_80 = arith.constant 3.125000e-02 : f32
    %167 = vector.broadcast %cst_80 : f32 to vector<16x1xf32>
    %168 = arith.mulf %166, %167 : vector<16x1xf32>
    %169 = arith.mulf %164, %164 : vector<16x32xf32>
    %cst_81 = arith.constant dense<0.000000e+00> : vector<16xf32>
    %170 = vector.multi_reduction <add>, %169, %cst_81 [1] : vector<16x32xf32> to vector<16xf32>
    %171 = vector.shape_cast %170 : vector<16xf32> to vector<16x1xf32>
    %cst_82 = arith.constant 3.125000e-02 : f32
    %172 = vector.broadcast %cst_82 : f32 to vector<16x1xf32>
    %173 = arith.mulf %171, %172 : vector<16x1xf32>
    %174 = arith.mulf %168, %168 : vector<16x1xf32>
    %175 = arith.subf %173, %174 : vector<16x1xf32>
    %176 = vector.broadcast %168 : vector<16x1xf32> to vector<16x32xf32>
    %177 = arith.subf %164, %176 : vector<16x32xf32>
    %cst_83 = arith.constant 9.99999974E-6 : f32
    %178 = vector.broadcast %cst_83 : f32 to vector<16x1xf32>
    %179 = arith.addf %175, %178 : vector<16x1xf32>
    %180 = math.rsqrt %179 : vector<16x1xf32>
    %181 = vector.broadcast %180 : vector<16x1xf32> to vector<16x32xf32>
    %182 = arith.mulf %177, %181 : vector<16x32xf32>
    %c0_84 = arith.constant 0 : index
    %c0_85 = arith.constant 0 : index
    %183 = vector.load %arg5[%c0_84, %c0_85] : memref<1x32xf32, #tpu.memory_space<vmem>>, vector<1x32xf32>
    %184 = vector.broadcast %183 : vector<1x32xf32> to vector<16x32xf32>
    %185 = arith.mulf %182, %184 : vector<16x32xf32>
    %c0_86 = arith.constant 0 : index
    %c0_87 = arith.constant 0 : index
    %186 = vector.load %arg6[%c0_86, %c0_87] : memref<1x32xf32, #tpu.memory_space<vmem>>, vector<1x32xf32>
    %187 = vector.broadcast %186 : vector<1x32xf32> to vector<16x32xf32>
    %188 = arith.addf %185, %187 : vector<16x32xf32>
    %189 = arith.truncf %188 : vector<16x32xf32> to vector<16x32xbf16>
    %c0_88 = arith.constant 0 : index
    %c0_89 = arith.constant 0 : index
    %190 = vector.load %arg7[%c0_88, %c0_89] : memref<32x32xbf16, #tpu.memory_space<vmem>>, vector<32x32xbf16>
    %cst_90 = arith.constant dense<0.000000e+00> : vector<16x32xf32>
    %191 = tpu.matmul %189, %190, %cst_90 {dimension_numbers = #tpu.dot_dimension_numbers<[1], [0], [0], [1], [0, 0, 1, 1], [], []>} : vector<16x32xbf16>, vector<32x32xbf16>, vector<16x32xf32> -> vector<16x32xf32>
    %c0_91 = arith.constant 0 : index
    %c0_92 = arith.constant 0 : index
    %192 = vector.load %arg8[%c0_91, %c0_92] : memref<1x32xf32, #tpu.memory_space<vmem>>, vector<1x32xf32>
    %193 = vector.broadcast %192 : vector<1x32xf32> to vector<16x32xf32>
    %194 = arith.addf %191, %193 : vector<16x32xf32>
    %195 = vector.shape_cast %194 : vector<16x32xf32> to vector<2x8x32xf32>
    %c0_93 = arith.constant 0 : index
    %c0_94 = arith.constant 0 : index
    %c0_95 = arith.constant 0 : index
    %196 = vector.load %arg9[%c0_93, %c0_94, %c0_95] : memref<2x8x32xf32, #tpu.memory_space<vmem>>, vector<2x8x32xf32>
    tpu.vector_store %arg9[%c0_93, %c0_94, %c0_95], %195 {strides = array<i32>} : memref<2x8x32xf32, #tpu.memory_space<vmem>>, vector<2x8x32xf32>,
    return
  }
  func.func @transform_0(%arg0: i32, %arg1: i32) -> (i32, i32, i32) {
    %c0_i32 = arith.constant 0 : i32
    %c0_i32_0 = arith.constant 0 : i32
    return %arg0, %arg1, %c0_i32 : i32, i32, i32
  }
  func.func @transform_1(%arg0: i32, %arg1: i32) -> (i32, i32) {
    %c0_i32 = arith.constant 0 : i32
    %c0_i32_0 = arith.constant 0 : i32
    %c0_i32_1 = arith.constant 0 : i32
    return %c0_i32, %c0_i32_0 : i32, i32
  }
  func.func @transform_2(%arg0: i32, %arg1: i32) -> (i32, i32) {
    %c0_i32 = arith.constant 0 : i32
    %c0_i32_0 = arith.constant 0 : i32
    %c0_i32_1 = arith.constant 0 : i32
    return %c0_i32, %c0_i32_0 : i32, i32
  }
  func.func @transform_3(%arg0: i32, %arg1: i32) -> (i32, i32) {
    %c0_i32 = arith.constant 0 : i32
    %c0_i32_0 = arith.constant 0 : i32
    %c0_i32_1 = arith.constant 0 : i32
    return %c0_i32, %c0_i32_0 : i32, i32
  }
  func.func @transform_4(%arg0: i32, %arg1: i32) -> (i32, i32) {
    %c0_i32 = arith.constant 0 : i32
    %c0_i32_0 = arith.constant 0 : i32
    %c0_i32_1 = arith.constant 0 : i32
    return %c0_i32, %c0_i32_0 : i32, i32
  }
  func.func @transform_5(%arg0: i32, %arg1: i32) -> (i32, i32) {
    %c0_i32 = arith.constant 0 : i32
    %c0_i32_0 = arith.constant 0 : i32
    %c0_i32_1 = arith.constant 0 : i32
    return %c0_i32, %c0_i32_0 : i32, i32
  }
  func.func @transform_6(%arg0: i32, %arg1: i32) -> (i32, i32) {
    %c0_i32 = arith.constant 0 : i32
    %c0_i32_0 = arith.constant 0 : i32
    %c0_i32_1 = arith.constant 0 : i32
    return %c0_i32, %c0_i32_0 : i32, i32
  }
  func.func @transform_7(%arg0: i32, %arg1: i32) -> (i32, i32, i32) {
    %c0_i32 = arith.constant 0 : i32
    %c0_i32_0 = arith.constant 0 : i32
    return %arg0, %arg1, %c0_i32 : i32, i32, i32
  }
}

module attributes {stable_mosaic.version = 11 : i64} {
  func.func @_gilr_kernel(%arg0: i32, %arg1: i32, %arg2: memref<2x8x32xbf16, #tpu.memory_space<vmem>>, %arg3: memref<32x96xbf16, #tpu.memory_space<vmem>>, %arg4: memref<1x96xf32, #tpu.memory_space<vmem>>, %arg5: memref<1x32xf32, #tpu.memory_space<vmem>>, %arg6: memref<1x32xf32, #tpu.memory_space<vmem>>, %arg7: memref<32x32xbf16, #tpu.memory_space<vmem>>, %arg8: memref<1x32xf32, #tpu.memory_space<vmem>>, %arg9: memref<2x8x32xf32, #tpu.memory_space<vmem>>, %arg10: memref<8x2x32xf32, #tpu.memory_space<vmem>>, %arg11: memref<8x2x32xbf16, #tpu.memory_space<vmem>>, %arg12: memref<2x32xf32, #tpu.memory_space<vmem>>) attributes {dimension_semantics = [#tpu.dimension_semantics<parallel>, #tpu.dimension_semantics<arbitrary>], iteration_bounds = array<i64: 1, 1>, scalar_prefetch = 0 : i64, scratch_operands = 3 : i64, tpu.core_type = #tpu.core_type<tc>, window_params = [{transform_indices = @transform_0, window_bounds = array<i64: 2, 8, 32>}, {pipeline_mode = #tpu.pipeline_mode<synchronous>, transform_indices = @transform_1, window_bounds = array<i64: 32, 96>}, {pipeline_mode = #tpu.pipeline_mode<synchronous>, transform_indices = @transform_2, window_bounds = array<i64: 1, 96>}, {pipeline_mode = #tpu.pipeline_mode<synchronous>, transform_indices = @transform_3, window_bounds = array<i64: 1, 32>}, {pipeline_mode = #tpu.pipeline_mode<synchronous>, transform_indices = @transform_4, window_bounds = array<i64: 1, 32>}, {pipeline_mode = #tpu.pipeline_mode<synchronous>, transform_indices = @transform_5, window_bounds = array<i64: 32, 32>}, {pipeline_mode = #tpu.pipeline_mode<synchronous>, transform_indices = @transform_6, window_bounds = array<i64: 1, 32>}, {transform_indices = @transform_7, window_bounds = array<i64: 2, 8, 32>}]} {
    %c0_i32 = arith.constant 0 : i32
    %0 = arith.cmpi eq, %arg1, %c0_i32 : i32
    %1 = arith.extui %0 : i1 to i32
    %c0_i32_0 = arith.constant 0 : i32
    %2 = arith.cmpi ne, %1, %c0_i32_0 : i32
    scf.if %2 {
      %cst_96 = arith.constant 0.000000e+00 : f32
      %197 = vector.broadcast %cst_96 : f32 to vector<2x32xf32>
      %c0_97 = arith.constant 0 : index
      %c0_98 = arith.constant 0 : index
      %198 = vector.load %arg12[%c0_97, %c0_98] : memref<2x32xf32, #tpu.memory_space<vmem>>, vector<2x32xf32>
      tpu.vector_store %arg12[%c0_97, %c0_98], %197 {strides = array<i32>} : memref<2x32xf32, #tpu.memory_space<vmem>>, vector<2x32xf32>,
    } else {
    }
    %c0 = arith.constant 0 : index
    %c0_1 = arith.constant 0 : index
    %c0_2 = arith.constant 0 : index
    %3 = vector.load %arg2[%c0, %c0_1, %c0_2] : memref<2x8x32xbf16, #tpu.memory_space<vmem>>, vector<2x8x32xbf16>
    %4 = vector.shape_cast %3 : vector<2x8x32xbf16> to vector<16x32xbf16>
    %c0_3 = arith.constant 0 : index
    %c0_4 = arith.constant 0 : index
    %5 = vector.load %arg3[%c0_3, %c0_4] : memref<32x96xbf16, #tpu.memory_space<vmem>>, vector<32x96xbf16>
    %cst = arith.constant dense<0.000000e+00> : vector<16x96xf32>
    %6 = tpu.matmul %4, %5, %cst {dimension_numbers = #tpu.dot_dimension_numbers<[1], [0], [0], [1], [0, 0, 1, 1], [], []>} : vector<16x32xbf16>, vector<32x96xbf16>, vector<16x96xf32> -> vector<16x96xf32>
    %c0_5 = arith.constant 0 : index
    %c0_6 = arith.constant 0 : index
    %7 = vector.load %arg4[%c0_5, %c0_6] : memref<1x96xf32, #tpu.memory_space<vmem>>, vector<1x96xf32>
    %8 = vector.broadcast %7 : vector<1x96xf32> to vector<16x96xf32>
    %9 = arith.addf %6, %8 : vector<16x96xf32>
    %10 = vector.extract_strided_slice %9 {offsets = [0, 0], sizes = [16, 32], strides = [1, 1]} : vector<16x96xf32> to vector<16x32xf32>
    %11 = vector.extract_strided_slice %9 {offsets = [0, 32], sizes = [16, 32], strides = [1, 1]} : vector<16x96xf32> to vector<16x32xf32>
    %12 = vector.extract_strided_slice %9 {offsets = [0, 64], sizes = [16, 32], strides = [1, 1]} : vector<16x96xf32> to vector<16x32xf32>
    %13 = arith.negf %11 : vector<16x32xf32>
    %14 = math.exp %13 : vector<16x32xf32>
    %cst_7 = arith.constant 1.000000e+00 : f32
    %15 = vector.broadcast %cst_7 : f32 to vector<16x32xf32>
    %16 = arith.addf %15, %14 : vector<16x32xf32>
    %17 = arith.divf %15, %16 : vector<16x32xf32>
    %18 = arith.mulf %11, %17 : vector<16x32xf32>
    %19 = vector.shape_cast %10 : vector<16x32xf32> to vector<2x8x32xf32>
    %20 = tpu.transpose %19, [1, 0, 2] : vector<2x8x32xf32> -> vector<8x2x32xf32>
    %c0_8 = arith.constant 0 : index
    %c0_9 = arith.constant 0 : index
    %c0_10 = arith.constant 0 : index
    %21 = vector.load %arg10[%c0_8, %c0_9, %c0_10] : memref<8x2x32xf32, #tpu.memory_space<vmem>>, vector<8x2x32xf32>
    tpu.vector_store %arg10[%c0_8, %c0_9, %c0_10], %20 {strides = array<i32>} : memref<8x2x32xf32, #tpu.memory_space<vmem>>, vector<8x2x32xf32>,
    %22 = arith.negf %12 : vector<16x32xf32>
    %23 = math.exp %22 : vector<16x32xf32>
    %cst_11 = arith.constant 1.000000e+00 : f32
    %24 = vector.broadcast %cst_11 : f32 to vector<16x32xf32>
    %25 = arith.addf %24, %23 : vector<16x32xf32>
    %26 = arith.divf %24, %25 : vector<16x32xf32>
    %27 = vector.shape_cast %26 : vector<16x32xf32> to vector<2x8x32xf32>
    %28 = tpu.transpose %27, [1, 0, 2] : vector<2x8x32xf32> -> vector<8x2x32xf32>
    %29 = arith.truncf %28 : vector<8x2x32xf32> to vector<8x2x32xbf16>
    %c0_12 = arith.constant 0 : index
    %c0_13 = arith.constant 0 : index
    %c0_14 = arith.constant 0 : index
    %30 = vector.load %arg11[%c0_12, %c0_13, %c0_14] : memref<8x2x32xbf16, #tpu.memory_space<vmem>>, vector<8x2x32xbf16>
    tpu.vector_store %arg11[%c0_12, %c0_13, %c0_14], %29 {strides = array<i32>} : memref<8x2x32xbf16, #tpu.memory_space<vmem>>, vector<8x2x32xbf16>,
    %c0_15 = arith.constant 0 : index
    %c0_16 = arith.constant 0 : index
    %31 = vector.load %arg12[%c0_15, %c0_16] : memref<2x32xf32, #tpu.memory_space<vmem>>, vector<2x32xf32>
    %c0_i32_17 = arith.constant 0 : i32
    %32 = arith.index_cast %c0_i32_17 : i32 to index
    %c0_18 = arith.constant 0 : index
    %c0_19 = arith.constant 0 : index
    %33 = vector.load %arg11[%32, %c0_18, %c0_19] : memref<8x2x32xbf16, #tpu.memory_space<vmem>>, vector<1x2x32xbf16>
    %34 = vector.shape_cast %33 : vector<1x2x32xbf16> to vector<2x32xbf16>
    %35 = arith.extf %34 : vector<2x32xbf16> to vector<2x32xf32>
    %36 = arith.mulf %35, %31 : vector<2x32xf32>
    %cst_20 = arith.constant 1.000000e+00 : f32
    %37 = vector.broadcast %cst_20 : f32 to vector<2x32xf32>
    %38 = arith.subf %37, %35 : vector<2x32xf32>
    %39 = arith.index_cast %c0_i32_17 : i32 to index
    %c0_21 = arith.constant 0 : index
    %c0_22 = arith.constant 0 : index
    %40 = vector.load %arg10[%39, %c0_21, %c0_22] : memref<8x2x32xf32, #tpu.memory_space<vmem>>, vector<1x2x32xf32>
    %41 = vector.shape_cast %40 : vector<1x2x32xf32> to vector<2x32xf32>
    %42 = arith.mulf %38, %41 : vector<2x32xf32>
    %43 = arith.addf %36, %42 : vector<2x32xf32>
    %44 = arith.index_cast %c0_i32_17 : i32 to index
    %c0_23 = arith.constant 0 : index
    %c0_24 = arith.constant 0 : index
    %45 = vector.load %arg10[%44, %c0_23, %c0_24] : memref<8x2x32xf32, #tpu.memory_space<vmem>>, vector<1x2x32xf32>
    %46 = vector.shape_cast %45 : vector<1x2x32xf32> to vector<2x32xf32>
    %47 = vector.shape_cast %43 : vector<2x32xf32> to vector<1x2x32xf32>
    tpu.vector_store %arg10[%44, %c0_23, %c0_24], %47 {strides = array<i32>} : memref<8x2x32xf32, #tpu.memory_space<vmem>>, vector<1x2x32xf32>,
    %c1_i32 = arith.constant 1 : i32
    %48 = arith.index_cast %c1_i32 : i32 to index
    %c0_25 = arith.constant 0 : index
    %c0_26 = arith.constant 0 : index
    %49 = vector.load %arg11[%48, %c0_25, %c0_26] : memref<8x2x32xbf16, #tpu.memory_space<vmem>>, vector<1x2x32xbf16>
    %50 = vector.shape_cast %49 : vector<1x2x32xbf16> to vector<2x32xbf16>
    %51 = arith.extf %50 : vector<2x32xbf16> to vector<2x32xf32>
    %52 = arith.mulf %51, %43 : vector<2x32xf32>
    %cst_27 = arith.constant 1.000000e+00 : f32
    %53 = vector.broadcast %cst_27 : f32 to vector<2x32xf32>
    %54 = arith.subf %53, %51 : vector<2x32xf32>
    %55 = arith.index_cast %c1_i32 : i32 to index
    %c0_28 = arith.constant 0 : index
    %c0_29 = arith.constant 0 : index
    %56 = vector.load %arg10[%55, %c0_28, %c0_29] : memref<8x2x32xf32, #tpu.memory_space<vmem>>, vector<1x2x32xf32>
    %57 = vector.shape_cast %56 : vector<1x2x32xf32> to vector<2x32xf32>
    %58 = arith.mulf %54, %57 : vector<2x32xf32>
    %59 = arith.addf %52, %58 : vector<2x32xf32>
    %60 = arith.index_cast %c1_i32 : i32 to index
    %c0_30 = arith.constant 0 : index
    %c0_31 = arith.constant 0 : index
    %61 = vector.load %arg10[%60, %c0_30, %c0_31] : memref<8x2x32xf32, #tpu.memory_space<vmem>>, vector<1x2x32xf32>
    %62 = vector.shape_cast %61 : vector<1x2x32xf32> to vector<2x32xf32>
    %63 = vector.shape_cast %59 : vector<2x32xf32> to vector<1x2x32xf32>
    tpu.vector_store %arg10[%60, %c0_30, %c0_31], %63 {strides = array<i32>} : memref<8x2x32xf32, #tpu.memory_space<vmem>>, vector<1x2x32xf32>,
    %c2_i32 = arith.constant 2 : i32
    %64 = arith.index_cast %c2_i32 : i32 to index
    %c0_32 = arith.constant 0 : index
    %c0_33 = arith.constant 0 : index
    %65 = vector.load %arg11[%64, %c0_32, %c0_33] : memref<8x2x32xbf16, #tpu.memory_space<vmem>>, vector<1x2x32xbf16>
    %66 = vector.shape_cast %65 : vector<1x2x32xbf16> to vector<2x32xbf16>
    %67 = arith.extf %66 : vector<2x32xbf16> to vector<2x32xf32>
    %68 = arith.mulf %67, %59 : vector<2x32xf32>
    %cst_34 = arith.constant 1.000000e+00 : f32
    %69 = vector.broadcast %cst_34 : f32 to vector<2x32xf32>
    %70 = arith.subf %69, %67 : vector<2x32xf32>
    %71 = arith.index_cast %c2_i32 : i32 to index
    %c0_35 = arith.constant 0 : index
    %c0_36 = arith.constant 0 : index
    %72 = vector.load %arg10[%71, %c0_35, %c0_36] : memref<8x2x32xf32, #tpu.memory_space<vmem>>, vector<1x2x32xf32>
    %73 = vector.shape_cast %72 : vector<1x2x32xf32> to vector<2x32xf32>
    %74 = arith.mulf %70, %73 : vector<2x32xf32>
    %75 = arith.addf %68, %74 : vector<2x32xf32>
    %76 = arith.index_cast %c2_i32 : i32 to index
    %c0_37 = arith.constant 0 : index
    %c0_38 = arith.constant 0 : index
    %77 = vector.load %arg10[%76, %c0_37, %c0_38] : memref<8x2x32xf32, #tpu.memory_space<vmem>>, vector<1x2x32xf32>
    %78 = vector.shape_cast %77 : vector<1x2x32xf32> to vector<2x32xf32>
    %79 = vector.shape_cast %75 : vector<2x32xf32> to vector<1x2x32xf32>
    tpu.vector_store %arg10[%76, %c0_37, %c0_38], %79 {strides = array<i32>} : memref<8x2x32xf32, #tpu.memory_space<vmem>>, vector<1x2x32xf32>,
    %c3_i32 = arith.constant 3 : i32
    %80 = arith.index_cast %c3_i32 : i32 to index
    %c0_39 = arith.constant 0 : index
    %c0_40 = arith.constant 0 : index
    %81 = vector.load %arg11[%80, %c0_39, %c0_40] : memref<8x2x32xbf16, #tpu.memory_space<vmem>>, vector<1x2x32xbf16>
    %82 = vector.shape_cast %81 : vector<1x2x32xbf16> to vector<2x32xbf16>
    %83 = arith.extf %82 : vector<2x32xbf16> to vector<2x32xf32>
    %84 = arith.mulf %83, %75 : vector<2x32xf32>
    %cst_41 = arith.constant 1.000000e+00 : f32
    %85 = vector.broadcast %cst_41 : f32 to vector<2x32xf32>
    %86 = arith.subf %85, %83 : vector<2x32xf32>
    %87 = arith.index_cast %c3_i32 : i32 to index
    %c0_42 = arith.constant 0 : index
    %c0_43 = arith.constant 0 : index
    %88 = vector.load %arg10[%87, %c0_42, %c0_43] : memref<8x2x32xf32, #tpu.memory_space<vmem>>, vector<1x2x32xf32>
    %89 = vector.shape_cast %88 : vector<1x2x32xf32> to vector<2x32xf32>
    %90 = arith.mulf %86, %89 : vector<2x32xf32>
    %91 = arith.addf %84, %90 : vector<2x32xf32>
    %92 = arith.index_cast %c3_i32 : i32 to index
    %c0_44 = arith.constant 0 : index
    %c0_45 = arith.constant 0 : index
    %93 = vector.load %arg10[%92, %c0_44, %c0_45] : memref<8x2x32xf32, #tpu.memory_space<vmem>>, vector<1x2x32xf32>
    %94 = vector.shape_cast %93 : vector<1x2x32xf32> to vector<2x32xf32>
    %95 = vector.shape_cast %91 : vector<2x32xf32> to vector<1x2x32xf32>
    tpu.vector_store %arg10[%92, %c0_44, %c0_45], %95 {strides = array<i32>} : memref<8x2x32xf32, #tpu.memory_space<vmem>>, vector<1x2x32xf32>,
    %c4_i32 = arith.constant 4 : i32
    %96 = arith.index_cast %c4_i32 : i32 to index
    %c0_46 = arith.constant 0 : index
    %c0_47 = arith.constant 0 : index
    %97 = vector.load %arg11[%96, %c0_46, %c0_47] : memref<8x2x32xbf16, #tpu.memory_space<vmem>>, vector<1x2x32xbf16>
    %98 = vector.shape_cast %97 : vector<1x2x32xbf16> to vector<2x32xbf16>
    %99 = arith.extf %98 : vector<2x32xbf16> to vector<2x32xf32>
    %100 = arith.mulf %99, %91 : vector<2x32xf32>
    %cst_48 = arith.constant 1.000000e+00 : f32
    %101 = vector.broadcast %cst_48 : f32 to vector<2x32xf32>
    %102 = arith.subf %101, %99 : vector<2x32xf32>
    %103 = arith.index_cast %c4_i32 : i32 to index
    %c0_49 = arith.constant 0 : index
    %c0_50 = arith.constant 0 : index
    %104 = vector.load %arg10[%103, %c0_49, %c0_50] : memref<8x2x32xf32, #tpu.memory_space<vmem>>, vector<1x2x32xf32>
    %105 = vector.shape_cast %104 : vector<1x2x32xf32> to vector<2x32xf32>
    %106 = arith.mulf %102, %105 : vector<2x32xf32>
    %107 = arith.addf %100, %106 : vector<2x32xf32>
    %108 = arith.index_cast %c4_i32 : i32 to index
    %c0_51 = arith.constant 0 : index
    %c0_52 = arith.constant 0 : index
    %109 = vector.load %arg10[%108, %c0_51, %c0_52] : memref<8x2x32xf32, #tpu.memory_space<vmem>>, vector<1x2x32xf32>
    %110 = vector.shape_cast %109 : vector<1x2x32xf32> to vector<2x32xf32>
    %111 = vector.shape_cast %107 : vector<2x32xf32> to vector<1x2x32xf32>
    tpu.vector_store %arg10[%108, %c0_51, %c0_52], %111 {strides = array<i32>} : memref<8x2x32xf32, #tpu.memory_space<vmem>>, vector<1x2x32xf32>,
    %c5_i32 = arith.constant 5 : i32
    %112 = arith.index_cast %c5_i32 : i32 to index
    %c0_53 = arith.constant 0 : index
    %c0_54 = arith.constant 0 : index
    %113 = vector.load %arg11[%112, %c0_53, %c0_54] : memref<8x2x32xbf16, #tpu.memory_space<vmem>>, vector<1x2x32xbf16>
    %114 = vector.shape_cast %113 : vector<1x2x32xbf16> to vector<2x32xbf16>
    %115 = arith.extf %114 : vector<2x32xbf16> to vector<2x32xf32>
    %116 = arith.mulf %115, %107 : vector<2x32xf32>
    %cst_55 = arith.constant 1.000000e+00 : f32
    %117 = vector.broadcast %cst_55 : f32 to vector<2x32xf32>
    %118 = arith.subf %117, %115 : vector<2x32xf32>
    %119 = arith.index_cast %c5_i32 : i32 to index
    %c0_56 = arith.constant 0 : index
    %c0_57 = arith.constant 0 : index
    %120 = vector.load %arg10[%119, %c0_56, %c0_57] : memref<8x2x32xf32, #tpu.memory_space<vmem>>, vector<1x2x32xf32>
    %121 = vector.shape_cast %120 : vector<1x2x32xf32> to vector<2x32xf32>
    %122 = arith.mulf %118, %121 : vector<2x32xf32>
    %123 = arith.addf %116, %122 : vector<2x32xf32>
    %124 = arith.index_cast %c5_i32 : i32 to index
    %c0_58 = arith.constant 0 : index
    %c0_59 = arith.constant 0 : index
    %125 = vector.load %arg10[%124, %c0_58, %c0_59] : memref<8x2x32xf32, #tpu.memory_space<vmem>>, vector<1x2x32xf32>
    %126 = vector.shape_cast %125 : vector<1x2x32xf32> to vector<2x32xf32>
    %127 = vector.shape_cast %123 : vector<2x32xf32> to vector<1x2x32xf32>
    tpu.vector_store %arg10[%124, %c0_58, %c0_59], %127 {strides = array<i32>} : memref<8x2x32xf32, #tpu.memory_space<vmem>>, vector<1x2x32xf32>,
    %c6_i32 = arith.constant 6 : i32
    %128 = arith.index_cast %c6_i32 : i32 to index
    %c0_60 = arith.constant 0 : index
    %c0_61 = arith.constant 0 : index
    %129 = vector.load %arg11[%128, %c0_60, %c0_61] : memref<8x2x32xbf16, #tpu.memory_space<vmem>>, vector<1x2x32xbf16>
    %130 = vector.shape_cast %129 : vector<1x2x32xbf16> to vector<2x32xbf16>
    %131 = arith.extf %130 : vector<2x32xbf16> to vector<2x32xf32>
    %132 = arith.mulf %131, %123 : vector<2x32xf32>
    %cst_62 = arith.constant 1.000000e+00 : f32
    %133 = vector.broadcast %cst_62 : f32 to vector<2x32xf32>
    %134 = arith.subf %133, %131 : vector<2x32xf32>
    %135 = arith.index_cast %c6_i32 : i32 to index
    %c0_63 = arith.constant 0 : index
    %c0_64 = arith.constant 0 : index
    %136 = vector.load %arg10[%135, %c0_63, %c0_64] : memref<8x2x32xf32, #tpu.memory_space<vmem>>, vector<1x2x32xf32>
    %137 = vector.shape_cast %136 : vector<1x2x32xf32> to vector<2x32xf32>
    %138 = arith.mulf %134, %137 : vector<2x32xf32>
    %139 = arith.addf %132, %138 : vector<2x32xf32>
    %140 = arith.index_cast %c6_i32 : i32 to index
    %c0_65 = arith.constant 0 : index
    %c0_66 = arith.constant 0 : index
    %141 = vector.load %arg10[%140, %c0_65, %c0_66] : memref<8x2x32xf32, #tpu.memory_space<vmem>>, vector<1x2x32xf32>
    %142 = vector.shape_cast %141 : vector<1x2x32xf32> to vector<2x32xf32>
    %143 = vector.shape_cast %139 : vector<2x32xf32> to vector<1x2x32xf32>
    tpu.vector_store %arg10[%140, %c0_65, %c0_66], %143 {strides = array<i32>} : memref<8x2x32xf32, #tpu.memory_space<vmem>>, vector<1x2x32xf32>,
    %c7_i32 = arith.constant 7 : i32
    %144 = arith.index_cast %c7_i32 : i32 to index
    %c0_67 = arith.constant 0 : index
    %c0_68 = arith.constant 0 : index
    %145 = vector.load %arg11[%144, %c0_67, %c0_68] : memref<8x2x32xbf16, #tpu.memory_space<vmem>>, vector<1x2x32xbf16>
    %146 = vector.shape_cast %145 : vector<1x2x32xbf16> to vector<2x32xbf16>
    %147 = arith.extf %146 : vector<2x32xbf16> to vector<2x32xf32>
    %148 = arith.mulf %147, %139 : vector<2x32xf32>
    %cst_69 = arith.constant 1.000000e+00 : f32
    %149 = vector.broadcast %cst_69 : f32 to vector<2x32xf32>
    %150 = arith.subf %149, %147 : vector<2x32xf32>
    %151 = arith.index_cast %c7_i32 : i32 to index
    %c0_70 = arith.constant 0 : index
    %c0_71 = arith.constant 0 : index
    %152 = vector.load %arg10[%151, %c0_70, %c0_71] : memref<8x2x32xf32, #tpu.memory_space<vmem>>, vector<1x2x32xf32>
    %153 = vector.shape_cast %152 : vector<1x2x32xf32> to vector<2x32xf32>
    %154 = arith.mulf %150, %153 : vector<2x32xf32>
    %155 = arith.addf %148, %154 : vector<2x32xf32>
    %156 = arith.index_cast %c7_i32 : i32 to index
    %c0_72 = arith.constant 0 : index
    %c0_73 = arith.constant 0 : index
    %157 = vector.load %arg10[%156, %c0_72, %c0_73] : memref<8x2x32xf32, #tpu.memory_space<vmem>>, vector<1x2x32xf32>
    %158 = vector.shape_cast %157 : vector<1x2x32xf32> to vector<2x32xf32>
    %159 = vector.shape_cast %155 : vector<2x32xf32> to vector<1x2x32xf32>
    tpu.vector_store %arg10[%156, %c0_72, %c0_73], %159 {strides = array<i32>} : memref<8x2x32xf32, #tpu.memory_space<vmem>>, vector<1x2x32xf32>,
    %c8_i32 = arith.constant 8 : i32
    %c0_74 = arith.constant 0 : index
    %c0_75 = arith.constant 0 : index
    %160 = vector.load %arg12[%c0_74, %c0_75] : memref<2x32xf32, #tpu.memory_space<vmem>>, vector<2x32xf32>
    tpu.vector_store %arg12[%c0_74, %c0_75], %155 {strides = array<i32>} : memref<2x32xf32, #tpu.memory_space<vmem>>, vector<2x32xf32>,
    %c0_76 = arith.constant 0 : index
    %c0_77 = arith.constant 0 : index
    %c0_78 = arith.constant 0 : index
    %161 = vector.load %arg10[%c0_76, %c0_77, %c0_78] : memref<8x2x32xf32, #tpu.memory_space<vmem>>, vector<8x2x32xf32>
    %162 = tpu.transpose %161, [1, 0, 2] : vector<8x2x32xf32> -> vector<2x8x32xf32>
    %163 = vector.shape_cast %162 : vector<2x8x32xf32> to vector<16x32xf32>
    %164 = arith.mulf %163, %18 : vector<16x32xf32>
    %cst_79 = arith.constant dense<0.000000e+00> : vector<16xf32>
    %165 = vector.multi_reduction <add>, %164, %cst_79 [1] : vector<16x32xf32> to vector<16xf32>
    %166 = vector.shape_cast %165 : vector<16xf32> to vector<16x1xf32>
    %cst_80 = arith.constant 3.125000e-02 : f32
    %167 = vector.broadcast %cst_80 : f32 to vector<16x1xf32>
    %168 = arith.mulf %166, %167 : vector<16x1xf32>
    %169 = arith.mulf %164, %164 : vector<16x32xf32>
    %cst_81 = arith.constant dense<0.000000e+00> : vector<16xf32>
    %170 = vector.multi_reduction <add>, %169, %cst_81 [1] : vector<16x32xf32> to vector<16xf32>
    %171 = vector.shape_cast %170 : vector<16xf32> to vector<16x1xf32>
    %cst_82 = arith.constant 3.125000e-02 : f32
    %172 = vector.broadcast %cst_82 : f32 to vector<16x1xf32>
    %173 = arith.mulf %171, %172 : vector<16x1xf32>
    %174 = arith.mulf %168, %168 : vector<16x1xf32>
    %175 = arith.subf %173, %174 : vector<16x1xf32>
    %176 = vector.broadcast %168 : vector<16x1xf32> to vector<16x32xf32>
    %177 = arith.subf %164, %176 : vector<16x32xf32>
    %cst_83 = arith.constant 9.99999974E-6 : f32
    %178 = vector.broadcast %cst_83 : f32 to vector<16x1xf32>
    %179 = arith.addf %175, %178 : vector<16x1xf32>
    %180 = math.rsqrt %179 : vector<16x1xf32>
    %181 = vector.broadcast %180 : vector<16x1xf32> to vector<16x32xf32>
    %182 = arith.mulf %177, %181 : vector<16x32xf32>
    %c0_84 = arith.constant 0 : index
    %c0_85 = arith.constant 0 : index
    %183 = vector.load %arg5[%c0_84, %c0_85] : memref<1x32xf32, #tpu.memory_space<vmem>>, vector<1x32xf32>
    %184 = vector.broadcast %183 : vector<1x32xf32> to vector<16x32xf32>
    %185 = arith.mulf %182, %184 : vector<16x32xf32>
    %c0_86 = arith.constant 0 : index
    %c0_87 = arith.constant 0 : index
    %186 = vector.load %arg6[%c0_86, %c0_87] : memref<1x32xf32, #tpu.memory_space<vmem>>, vector<1x32xf32>
    %187 = vector.broadcast %186 : vector<1x32xf32> to vector<16x32xf32>
    %188 = arith.addf %185, %187 : vector<16x32xf32>
    %189 = arith.truncf %188 : vector<16x32xf32> to vector<16x32xbf16>
    %c0_88 = arith.constant 0 : index
    %c0_89 = arith.constant 0 : index
    %190 = vector.load %arg7[%c0_88, %c0_89] : memref<32x32xbf16, #tpu.memory_space<vmem>>, vector<32x32xbf16>
    %cst_90 = arith.constant dense<0.000000e+00> : vector<16x32xf32>
    %191 = tpu.matmul %189, %190, %cst_90 {dimension_numbers = #tpu.dot_dimension_numbers<[1], [0], [0], [1], [0, 0, 1, 1], [], []>} : vector<16x32xbf16>, vector<32x32xbf16>, vector<16x32xf32> -> vector<16x32xf32>
    %c0_91 = arith.constant 0 : index
    %c0_92 = arith.constant 0 : index
    %192 = vector.load %arg8[%c0_91, %c0_92] : memref<1x32xf32, #tpu.memory_space<vmem>>, vector<1x32xf32>
    %193 = vector.broadcast %192 : vector<1x32xf32> to vector<16x32xf32>
    %194 = arith.addf %191, %193 : vector<16x32xf32>
    %195 = vector.shape_cast %194 : vector<16x32xf32> to vector<2x8x32xf32>
    %c0_93 = arith.constant 0 : index
    %c0_94 = arith.constant 0 : index
    %c0_95 = arith.constant 0 : index
    %196 = vector.load %arg9[%c0_93, %c0_94, %c0_95] : memref<2x8x32xf32, #tpu.memory_space<vmem>>, vector<2x8x32xf32>
    tpu.vector_store %arg9[%c0_93, %c0_94, %c0_95], %195 {strides = array<i32>} : memref<2x8x32xf32, #tpu.memory_space<vmem>>, vector<2x8x32xf32>,
    return
  }
  func.func @transform_0(%arg0: i32, %arg1: i32) -> (i32, i32, i32) {
    %c0_i32 = arith.constant 0 : i32
    %c0_i32_0 = arith.constant 0 : i32
    return %arg0, %arg1, %c0_i32 : i32, i32, i32
  }
  func.func @transform_1(%arg0: i32, %arg1: i32) -> (i32, i32) {
    %c0_i32 = arith.constant 0 : i32
    %c0_i32_0 = arith.constant 0 : i32
    %c0_i32_1 = arith.constant 0 : i32
    return %c0_i32, %c0_i32_0 : i32, i32
  }
  func.func @transform_2(%arg0: i32, %arg1: i32) -> (i32, i32) {
    %c0_i32 = arith.constant 0 : i32
    %c0_i32_0 = arith.constant 0 : i32
    %c0_i32_1 = arith.constant 0 : i32
    return %c0_i32, %c0_i32_0 : i32, i32
  }
  func.func @transform_3(%arg0: i32, %arg1: i32) -> (i32, i32) {
    %c0_i32 = arith.constant 0 : i32
    %c0_i32_0 = arith.constant 0 : i32
    %c0_i32_1 = arith.constant 0 : i32
    return %c0_i32, %c0_i32_0 : i32, i32
  }
  func.func @transform_4(%arg0: i32, %arg1: i32) -> (i32, i32) {
    %c0_i32 = arith.constant 0 : i32
    %c0_i32_0 = arith.constant 0 : i32
    %c0_i32_1 = arith.constant 0 : i32
    return %c0_i32, %c0_i32_0 : i32, i32
  }
  func.func @transform_5(%arg0: i32, %arg1: i32) -> (i32, i32) {
    %c0_i32 = arith.constant 0 : i32
    %c0_i32_0 = arith.constant 0 : i32
    %c0_i32_1 = arith.constant 0 : i32
    return %c0_i32, %c0_i32_0 : i32, i32
  }
  func.func @transform_6(%arg0: i32, %arg1: i32) -> (i32, i32) {
    %c0_i32 = arith.constant 0 : i32
    %c0_i32_0 = arith.constant 0 : i32
    %c0_i32_1 = arith.constant 0 : i32
    return %c0_i32, %c0_i32_0 : i32, i32
  }
  func.func @transform_7(%arg0: i32, %arg1: i32) -> (i32, i32, i32) {
    %c0_i32 = arith.constant 0 : i32
    %c0_i32_0 = arith.constant 0 : i32
    return %arg0, %arg1, %c0_i32 : i32, i32, i32
  }
}

</mosaic_0001>

<bundles_post_ra>
// kernel: tpu_custom_call.1
= control target key start
LH: loop header
LB: loop body
LE: loop exit
PB: predicated region body
PF: predicated region fallthrough
CT: control target
= control target key end

     0   :  { %12 = vsyncpa [#allocation6], 0  ;;  %s1169_s0 = inlined_call_operand.hbm [shape: bf16[2,8,32], index: 0, kind: input, shape index: {}]   ;;  %s1170_s1 = inlined_call_operand.hbm [shape: bf16[32,96], index: 1, kind: input, shape index: {}]   ;;  %s1171_s2 = inlined_call_operand.hbm [shape: f32[1,96], index: 2, kind: input, shape index: {}]   ;;  %s1172_s3 = inlined_call_operand.hbm [shape: f32[1,32], index: 3, kind: input, shape index: {}]   ;;  %s1173_s4 = inlined_call_operand.hbm [shape: f32[1,32], index: 4, kind: input, shape index: {}]   ;;  %s1174_s5 = inlined_call_operand.hbm [shape: bf16[32,32], index: 5, kind: input, shape index: {}]   ;;  %s1175_s6 = inlined_call_operand.hbm [shape: f32[1,32], index: 6, kind: input, shape index: {}]   ;;  %s1176_s7 = inlined_call_operand.hbm [shape: f32[2,8,32], index: 7, kind: output, shape index: {}]  }
   0x1   :  { %13 = vsyncpa [#allocation9], 0 }
   0x2   :  { %14 = vsyncpa [#allocation12], 0 }
   0x3   :  { %15 = vsyncpa [#allocation15], 0 }
   0x4   :  { %16 = vsyncpa [#allocation7], 0  ;;  %s925_s24 = smov [#allocation8]   ;;  %s926_s26 = smov [#allocation11]  }
   0x5   :  { %s34_s25 = sshll.u32 %s925_s24, 4  ;;  %s57_s27 = sshll.u32 %s926_s26, 4  ;;  %s35_s25 = int_to_ptr.vmem [resolvable:$true] %s34_s25  ;;  %s982_s27 = int_to_ptr.vmem [resolvable:$true] %s57_s27 }
   0x6   :  { %s739_s30 = scalar_lea.hbm %s1170_s1, 256 }
   0x7   :  { %p740_p0 = scmp.ne.s32.totalorder %s1170_s1, %s739_s30  ;;  %p743_p1 = scmp.lt.u32.totalorder %s739_s30, %s1170_s1 }
   0x9   :  { %p745_p2 = pnand %p743_p1, %p740_p0 }
   0xb   :  { %748 = shalt.err (!%p745_p2)
}
   0xc   :  { %s749_s12 = scalar_lea.vmem %s35_s25, 256  ;;  %p754_p4 = scmp.lt.s32.totalorder %s35_s25, %s35_s25 }
   0xd   :  { %p750_p3 = scmp.ne.s32.totalorder %s35_s25, %s749_s12  ;;  %p755_p5 = scmp.lt.s32.totalorder %s749_s12, %s749_s12 }
   0xf   :  { %p756_p6 = por %p755_p5, %p754_p4 }
  0x11   :  { %p757_p7 = pnand %p756_p6, %p750_p3 }
  0x13   :  { %760 = shalt.err (!%p757_p7)
}
  0x14   :  { %s927_s13 = smov 64   ;;  %s928_s14 = smov 4  }
  0x15   :  { %40 = dma.hbm_to_vmem [thread:$0]  %s1170_s1, 256, %s35_s25, [#allocation9], %s927_s13, %s927_s13, %s928_s14  }
  0x16   :  { %s761_s19 = scalar_lea.hbm %s1172_s3, 16 }
  0x17   :  { %p762_p8 = scmp.ne.s32.totalorder %s1172_s3, %s761_s19  ;;  %p765_p9 = scmp.lt.u32.totalorder %s761_s19, %s1172_s3 }
  0x19   :  { %p767_p10 = pnand %p765_p9, %p762_p8 }
  0x1b   :  { %770 = shalt.err (!%p767_p10)
}
  0x1c   :  { %s771_s24 = scalar_lea.vmem %s982_s27, 16  ;;  %s775_s1 = scalar_lea.vmem %s982_s27, 32 }
  0x1d   :  { %p772_p11 = scmp.ne.s32.totalorder %s982_s27, %s771_s24  ;;  %p776_p12 = scmp.lt.s32.totalorder %s982_s27, %s982_s27 }
  0x1e   :  { %p777_p13 = scmp.lt.s32.totalorder %s775_s1, %s771_s24 }
  0x20   :  { %p778_p0 = por %p777_p13, %p776_p12 }
  0x22   :  { %p779_p1 = pnand %p778_p0, %p772_p11 }
  0x24   :  { %782 = shalt.err (!%p779_p1)
}
  0x25   :  { %60 = dma.hbm_to_vmem [thread:$0]  %s1172_s3, 16, %s982_s27, [#allocation12]  }
  0x26   :  { %s929_s28 = smov [#allocation14]   ;;  %s930_s30 = smov [#allocation5]  }
  0x27   :  { %s76_s29 = sshll.u32 %s929_s28, 4  ;;  %s22_s8 = sshll.u32 %s930_s30, 4  ;;  %s77_s29 = int_to_ptr.vmem [resolvable:$true] %s76_s29  ;;  %s1017_s8 = int_to_ptr.vmem [resolvable:$true] %s22_s8 }
  0x28   :  { %s783_s11 = scalar_lea.hbm %s1174_s5, 256 }
  0x29   :  { %p784_p2 = scmp.ne.s32.totalorder %s1174_s5, %s783_s11  ;;  %p787_p3 = scmp.lt.u32.totalorder %s783_s11, %s1174_s5 }
  0x2b   :  { %p789_p4 = pnand %p787_p3, %p784_p2 }
  0x2d   :  { %792 = shalt.err (!%p789_p4)
}
  0x2e   :  { %s793_s3 = scalar_lea.vmem %s77_s29, 256  ;;  %p798_p6 = scmp.lt.s32.totalorder %s77_s29, %s77_s29 }
  0x2f   :  { %p794_p5 = scmp.ne.s32.totalorder %s77_s29, %s793_s3  ;;  %p799_p7 = scmp.lt.s32.totalorder %s793_s3, %s793_s3 }
  0x31   :  { %p800_p8 = por %p799_p7, %p798_p6 }
  0x33   :  { %p801_p9 = pnand %p800_p8, %p794_p5 }
  0x35   :  { %804 = shalt.err (!%p801_p9)
}
  0x36   :  { %82 = dma.hbm_to_vmem [thread:$0]  %s1174_s5, 256, %s77_s29, [#allocation15], %s927_s13, %s927_s13, %s928_s14  }
  0x37   :  { %s805_s21 = scalar_lea.hbm %s1169_s0, 128 }
  0x38   :  { %p806_p10 = scmp.ne.s32.totalorder %s1169_s0, %s805_s21  ;;  %p809_p11 = scmp.lt.u32.totalorder %s805_s21, %s1169_s0 }
  0x3a   :  { %p811_p12 = pnand %p809_p11, %p806_p10 }
  0x3c   :  { %814 = shalt.err (!%p811_p12)
}
  0x3d   :  { %s815_s25 = scalar_lea.vmem %s1017_s8, 128  ;;  %p820_p0 = scmp.lt.s32.totalorder %s1017_s8, %s1017_s8 }
  0x3e   :  { %p816_p13 = scmp.ne.s32.totalorder %s1017_s8, %s815_s25  ;;  %p821_p1 = scmp.lt.s32.totalorder %s815_s25, %s815_s25 }
  0x40   :  { %p822_p2 = por %p821_p1, %p820_p0 }
  0x42   :  { %p823_p3 = pnand %p822_p2, %p816_p13 }
  0x44   :  { %826 = shalt.err (!%p823_p3)
}
  0x45   :  { %28 = dma.hbm_to_vmem [thread:$0]  %s1169_s0, 128, %s1017_s8, [#allocation6], %s927_s13, %s927_s13, %s928_s14  }
  0x46   :  { %s931_s28 = smov [#allocation10]   ;;  %s932_s30 = smov [#allocation13]  }
  0x47   :  { %s47_s29 = sshll.u32 %s931_s28, 4  ;;  %s67_s9 = sshll.u32 %s932_s30, 4  ;;  %s48_s29 = int_to_ptr.vmem [resolvable:$true] %s47_s29  ;;  %s68_s9 = int_to_ptr.vmem [resolvable:$true] %s67_s9 }
  0x48   :  { %s827_s12 = scalar_lea.hbm %s1171_s2, 16 }
  0x49   :  { %p828_p4 = scmp.ne.s32.totalorder %s1171_s2, %s827_s12  ;;  %p831_p5 = scmp.lt.u32.totalorder %s827_s12, %s1171_s2 }
  0x4b   :  { %p833_p6 = pnand %p831_p5, %p828_p4 }
  0x4d   :  { %836 = shalt.err (!%p833_p6)
}
  0x4e   :  { %s837_s0 = scalar_lea.vmem %s48_s29, 16  ;;  %s841_s14 = scalar_lea.vmem %s48_s29, 32 }
  0x4f   :  { %p838_p7 = scmp.ne.s32.totalorder %s48_s29, %s837_s0  ;;  %p842_p8 = scmp.lt.s32.totalorder %s48_s29, %s48_s29 }
  0x50   :  { %p843_p9 = scmp.lt.s32.totalorder %s841_s14, %s837_s0 }
  0x52   :  { %p844_p10 = por %p843_p9, %p842_p8 }
  0x54   :  { %p845_p11 = pnand %p844_p10, %p838_p7 }
  0x56   :  { %848 = shalt.err (!%p845_p11)
}
  0x57   :  { %50 = dma.hbm_to_vmem [thread:$0]  %s1171_s2, 16, %s48_s29, [#allocation9]  }
  0x58   :  { %s849_s20 = scalar_lea.hbm %s1173_s4, 16 }
  0x59   :  { %p850_p12 = scmp.ne.s32.totalorder %s1173_s4, %s849_s20  ;;  %p853_p13 = scmp.lt.u32.totalorder %s849_s20, %s1173_s4 }
  0x5b   :  { %p855_p0 = pnand %p853_p13, %p850_p12 }
  0x5d   :  { %858 = shalt.err (!%p855_p0)
}
  0x5e   :  { %s859_s1 = scalar_lea.vmem %s68_s9, 16  ;;  %s863_s25 = scalar_lea.vmem %s68_s9, 32 }
  0x5f   :  { %p860_p1 = scmp.ne.s32.totalorder %s68_s9, %s859_s1  ;;  %p864_p2 = scmp.lt.s32.totalorder %s68_s9, %s68_s9 }
  0x60   :  { %p865_p3 = scmp.lt.s32.totalorder %s863_s25, %s859_s1 }
  0x62   :  { %p866_p4 = por %p865_p3, %p864_p2 }
  0x64   :  { %p867_p5 = pnand %p866_p4, %p860_p1 }
  0x66   :  { %870 = shalt.err (!%p867_p5)
}
  0x67   :  { %70 = dma.hbm_to_vmem [thread:$0]  %s1173_s4, 16, %s68_s9, [#allocation12]  }
  0x68   :  { %s933_s26 = smov [#allocation16]   ;;  %s871_s10 = scalar_lea.hbm %s1175_s6, 16 }
  0x69   :  { %s89_s28 = sshll.u32 %s933_s26, 4  ;;  %p872_p6 = scmp.ne.s32.totalorder %s1175_s6, %s871_s10  ;;  %s90_s28 = int_to_ptr.vmem [resolvable:$true] %s89_s28 }
  0x6a   :  { %p875_p7 = scmp.lt.u32.totalorder %s871_s10, %s1175_s6 }
  0x6c   :  { %p877_p8 = pnand %p875_p7, %p872_p6 }
  0x6e   :  { %880 = shalt.err (!%p877_p8)
}
  0x6f   :  { %s881_s17 = scalar_lea.vmem %s90_s28, 16  ;;  %s885_s4 = scalar_lea.vmem %s90_s28, 32 }
  0x70   :  { %p882_p9 = scmp.ne.s32.totalorder %s90_s28, %s881_s17  ;;  %p886_p10 = scmp.lt.s32.totalorder %s90_s28, %s90_s28 }
  0x71   :  { %p887_p11 = scmp.lt.s32.totalorder %s885_s4, %s881_s17 }
  0x73   :  { %p888_p12 = por %p887_p11, %p886_p10 }
  0x75   :  { %p889_p13 = pnand %p888_p12, %p882_p9 }
  0x77   :  { %892 = shalt.err (!%p889_p13)
}
  0x78   :  { %92 = dma.hbm_to_vmem [thread:$0]  %s1175_s6, 16, %s90_s28, [#allocation15]  }
  0x79   :  { %915 = dma.done.wait [#allocation6], 128  }
  0x7a   :  { %916 = vsyncadd [#allocation6], 4294967168 }
  0x7b   :  { %917 = dma.done.wait [#allocation9], 272  }
  0x7c   :  { %918 = vsyncadd [#allocation9], 4294967024 }
  0x7d   :  { %919 = dma.done.wait [#allocation12], 32  }
  0x7e   :  { %920 = vsyncadd [#allocation12], 4294967264 }
  0x7f   :  { %921 = dma.done.wait [#allocation15], 272  }
  0x80   :  { %922 = vsyncadd [#allocation15], 4294967024  ;;  %v934_v0 = vmov 0.0   ;;  %vm935_vm0 = vmmov 0   ;;  %v714_v1 = vld [vmem:[#allocation8] sm:$0xff]   ;;  %v715_v2 = vld [vmem:[#allocation8 + $0x8] sm:$0xff]   ;;  %v214_v6 = vlaneseq }
  0x81   :  { %681 = vmatprep.subr.bf16.mxu0 %v934_v0  ;;  %685 = vmatprep.mubr.msk.bf16.mxu0 %vm935_vm0, %v934_v0  ;;  %v716_v3 = vld [vmem:[#allocation5] sm:$0xff]   ;;  %vm151_vm1 = vcmask 261120   ;;  %vm119_vm2 = vcmask 254976   ;;  %v936_v4 = vmov 1983009808   ;;  %s938_s6 = smov 96  }
  0x82   :  { %689 = vmatprep.subr.bf16.mxu1 %v934_v0  ;;  %693 = vmatprep.mubr.msk.bf16.mxu1 %vm935_vm0, %v934_v0  ;;  %120 = vst.msk [vmem:[#allocation4] sm:$0x3] %vm119_vm2, %v934_v0  ;;  %v212_v5 = vunpack.c.l.s4 %v936_v4  ;;  %v662_v7 = vld [vmem:[#allocation10] ss:$0 sm:$0xff]  ;;  %v215_v9 = vshrl.u32 %v214_v6, 7  ;;  %vm367_vm3 = vcmask 253952  }
  0x83   :  { %682 = vmatpush3.bf16.msra.mxu0 %v714_v1  ;;  %v937_v10 = vmov 1934713408  }
  0x84   :  { %683 = vmatprep.subr.bf16.mxu0 %v934_v0  ;;  %v213_v8 = vunpack.c.0.s8 %v212_v5  ;;  %v243_v11 = vunpack.c.l.s4 %v937_v10 }
  0x86   :  { %v216_v15 = vsub.s32 %v213_v8, %v215_v9  ;;  %v244_v17 = vunpack.c.0.s8 %v243_v11 }
  0x87   :  { %684 = vmatpush3.bf16.msra.mxu0 %v715_v2 }
  0x88   :  { %v1100_v26 = vsub.s32 %v244_v17, %v215_v9 }
  0x89   :  { %v376_v17 = vld [vmem:[#allocation4] sm:$0x3] }
  0x8a   :  { %686 = vmatmul.mubr.msk.bf16.vlgmr.msra.gmra.mrb[0].mxu0 %vm151_vm1, %v716_v3 }
 0x15d   :  { %v189_v12 = vpop.f32.mrb[0].mxu0 }
 0x15e   :  { %v190_v13 = vadd.f32 %v662_v7, %v189_v12  ;;  %v687_v14 = vpop.f32.mrb[1].mxu0 }
 0x15f   :  { %v192_v16 = vpop.f32.mrb[2].mxu0 }
 0x160   :  { %v667_v18 = vmul.f32 -1.442695, %v190_v13  ;;  %v210_v19 = vcombine.high %v190_v13, %v934_v0  ;;  %v193_v20 = vadd.f32 %v662_v7, %v192_v16  ;;  %v688_v21 = vpop.f32.mrb[3].mxu0  ;;  %v217_v24 = vrot.slane %v190_v13, %v216_v15 }
 0x162   :  { %723 = vpow2.f32 %v667_v18  ;;  %v668_v22 = vmul.f32 -1.442695, %v193_v20  ;;  %v225_v23 = vcombine.high %v193_v20, %v934_v0  ;;  %v232_v25 = vrot.slane %v193_v20, %v216_v15 }
 0x163   :  { %v224_v27 = vrot.slane %v210_v19, %v216_v15 }
 0x164   :  { %725 = vpow2.f32 %v668_v22  ;;  %v239_v28 = vrot.slane %v225_v23, %v216_v15  ;;  %v240_v29 = vcombine.low %v217_v24, %v232_v25  ;;  %v241_v30 = vcombine.high %v217_v24, %v232_v25 }
 0x166   :  { %v256_v31 = vcombine.low %v224_v27, %v239_v28  ;;  %v257_v32 = vcombine.high %v224_v27, %v239_v28  ;;  %v248_v33 = vrot.slane %v240_v29, %v1100_v26  ;;  %v255_v34 = vrot.slane %v241_v30, %v1100_v26 }
 0x168   :  { %v264_v35 = vrot.slane %v256_v31, %v1100_v26  ;;  %v271_v36 = vrot.slane %v257_v32, %v1100_v26  ;;  %v272_v37 = vcombine.high %v248_v33, %v934_v0  ;;  %v273_v38 = vcombine.high %v255_v34, %v934_v0  ;;  %277 = vst.msk [vmem:[#allocation2] sm:$0x3] %vm119_vm2, %v248_v33 }
 0x169   :  { %279 = vst.msk [vmem:[#allocation2 + $0x4] sm:$0x3] %vm119_vm2, %v255_v34 }
 0x16a   :  { %v274_v39 = vcombine.high %v264_v35, %v934_v0  ;;  %v275_v40 = vcombine.high %v271_v36, %v934_v0  ;;  %281 = vst.msk [vmem:[#allocation2 + $0x8] sm:$0x3] %vm119_vm2, %v264_v35  ;;  %283 = vst.msk [vmem:[#allocation2 + $0xc] sm:$0x3] %vm119_vm2, %v271_v36 }
 0x16b   :  { %278 = vst.msk [vmem:[#allocation2 + $0x2] sm:$0x3] %vm119_vm2, %v272_v37  ;;  %280 = vst.msk [vmem:[#allocation2 + $0x6] sm:$0x3] %vm119_vm2, %v273_v38 }
 0x16c   :  { %v724_v41 = vpop.eup %723  ;;  %282 = vst.msk [vmem:[#allocation2 + $0xa] sm:$0x3] %vm119_vm2, %v274_v39  ;;  %284 = vst.msk [vmem:[#allocation2 + $0xe] sm:$0x3] %vm119_vm2, %v275_v40 }
 0x16d   :  { %v202_v42 = vadd.f32 1.0, %v724_v41 }
 0x16e   :  { %v726_v43 = vpop.eup %725 }
 0x16f   :  { %727 = vrcp.f32 %v202_v42  ;;  %v203_v44 = vadd.f32 1.0, %v726_v43  ;;  %v381_v21 = vld [vmem:[#allocation2] sm:$0x3] }
 0x170   :  { %v401_v36 = vld [vmem:[#allocation2 + $0x4] sm:$0x3] }
 0x171   :  { %729 = vrcp.f32 %v203_v44 }
 0x172   :  { %v391_v29 = vld [vmem:[#allocation2 + $0x2] sm:$0x3]  ;;  %v411_v43 = vld [vmem:[#allocation2 + $0x6] sm:$0x3] }
 0x179   :  { %v728_v45 = vpop.eup %727 }
 0x17a   :  { %287 = vrot.lane.b32.xlu0 %v728_v45, %s927_s13  ;;  %v208_v46 = vmul.f32 %v728_v45, %v190_v13 }
 0x17b   :  { %v730_v47 = vpop.eup %729 }
 0x17c   :  { %516 = vrot.lane.b32.xlu1 %v208_v46, %s938_s6  ;;  %v209_v48 = vmul.f32 %v730_v47, %v193_v20 }
 0x17e   :  { %289 = vrot.lane.b32.xlu0 %v730_v47, %s927_s13  ;;  %s939_s13 = smov [#allocation17]  }
 0x17f   :  { %s647_s0 = sshll.u32 %s939_s13, 4  ;;  %s648_s0 = int_to_ptr.vmem [resolvable:$true] %s647_s0 }
 0x180   :  { %518 = vrot.lane.b32.xlu1 %v209_v48, %s938_s6  ;;  %s893_s14 = scalar_lea.vmem %s648_s0, 256  ;;  %p898_p1 = scmp.lt.s32.totalorder %s648_s0, %s648_s0 }
 0x181   :  { %p894_p0 = scmp.ne.s32.totalorder %s648_s0, %s893_s14  ;;  %p899_p2 = scmp.lt.s32.totalorder %s893_s14, %s893_s14 }
 0x183   :  { %p900_p3 = por %p899_p2, %p898_p1 }
 0x185   :  { %p901_p4 = pnand %p900_p3, %p894_p0 }
 0x1ec   :  { %v288_v49 = vpop.permute.xlu0 %287 }
 0x1ed   :  { %v293_v50 = vcombine.high %v288_v49, %v934_v0  ;;  %v300_v52 = vrot.slane %v288_v49, %v216_v15 }
 0x1ef   :  { %v307_v55 = vrot.slane %v293_v50, %v216_v15  ;;  %v421_v50 = vld [vmem:[#allocation2 + $0x8] sm:$0x3] }
 0x1f0   :  { %v290_v51 = vpop.permute.xlu0 %289 }
 0x1f1   :  { %v308_v53 = vcombine.high %v290_v51, %v934_v0  ;;  %v315_v54 = vrot.slane %v290_v51, %v216_v15 }
 0x1f3   :  { %v322_v56 = vrot.slane %v308_v53, %v216_v15  ;;  %v323_v57 = vcombine.low %v300_v52, %v315_v54  ;;  %v324_v58 = vcombine.high %v300_v52, %v315_v54 }
 0x1f5   :  { %v331_v59 = vrot.slane %v323_v57, %v1100_v26  ;;  %v338_v60 = vrot.slane %v324_v58, %v1100_v26  ;;  %v339_v61 = vcombine.low %v307_v55, %v322_v56  ;;  %v340_v62 = vcombine.high %v307_v55, %v322_v56  ;;  %v431_v57 = vld [vmem:[#allocation2 + $0xa] sm:$0x3] }
 0x1f7   :  { %v347_v63 = vrot.slane %v339_v61, %v1100_v26  ;;  %v354_v1 = vrot.slane %v340_v62, %v1100_v26  ;;  %v355_v2 = vcombine.high %v331_v59, %v934_v0  ;;  %v356_v3 = vcombine.high %v338_v60, %v934_v0 }
 0x1f8   :  { %v359_v4 = vpack.c.bf16 %v331_v59, %v331_v59  ;;  %v361_v5 = vpack.c.bf16 %v338_v60, %v338_v60 }
 0x1f9   :  { %v357_v6 = vcombine.high %v347_v63, %v934_v0  ;;  %v358_v7 = vcombine.high %v354_v1, %v934_v0  ;;  %v360_v8 = vpack.c.bf16 %v355_v2, %v355_v2  ;;  %v362_v9 = vpack.c.bf16 %v356_v3, %v356_v3 }
 0x1fa   :  { %v363_v10 = vpack.c.bf16 %v347_v63, %v347_v63  ;;  %v365_v11 = vpack.c.bf16 %v354_v1, %v354_v1  ;;  %368 = vst.msk [vmem:[#allocation3] sm:$0x1] %vm367_vm3, %v359_v4  ;;  %370 = vst.msk [vmem:[#allocation3 + $0x2] sm:$0x1] %vm367_vm3, %v361_v5  ;;  %v441_v63 = vld [vmem:[#allocation2 + $0xc] sm:$0x3] }
 0x1fb   :  { %v364_v12 = vpack.c.bf16 %v357_v6, %v357_v6  ;;  %v366_v13 = vpack.c.bf16 %v358_v7, %v358_v7  ;;  %369 = vst.msk [vmem:[#allocation3 + $0x1] sm:$0x1] %vm367_vm3, %v360_v8  ;;  %371 = vst.msk [vmem:[#allocation3 + $0x3] sm:$0x1] %vm367_vm3, %v362_v9  ;;  %v451_v5 = vld [vmem:[#allocation2 + $0xe] sm:$0x3] }
 0x1fc   :  { %372 = vst.msk [vmem:[#allocation3 + $0x4] sm:$0x1] %vm367_vm3, %v363_v10  ;;  %374 = vst.msk [vmem:[#allocation3 + $0x6] sm:$0x1] %vm367_vm3, %v365_v11 }
 0x1fd   :  { %373 = vst.msk [vmem:[#allocation3 + $0x5] sm:$0x1] %vm367_vm3, %v364_v12  ;;  %375 = vst.msk [vmem:[#allocation3 + $0x7] sm:$0x1] %vm367_vm3, %v366_v13 }
 0x201   :  { %v377_v14 = vld [vmem:[#allocation3] sm:$0x1]  ;;  %v396_v19 = vld [vmem:[#allocation3 + $0x2] sm:$0x1] }
 0x202   :  { %v378_v15 = vunpack.c.l.bf16 %v377_v14  ;;  %v386_v16 = vld [vmem:[#allocation3 + $0x1] sm:$0x1]  ;;  %v397_v25 = vunpack.c.l.bf16 %v396_v19  ;;  %v406_v27 = vld [vmem:[#allocation3 + $0x3] sm:$0x1]  ;;  %v517_v14 = vpop.permute.xlu1 %516 }
 0x203   :  { %v387_v18 = vunpack.c.l.bf16 %v386_v16  ;;  %v407_v33 = vunpack.c.l.bf16 %v406_v27  ;;  %v416_v34 = vld [vmem:[#allocation3 + $0x4] sm:$0x1]  ;;  %v436_v48 = vld [vmem:[#allocation3 + $0x6] sm:$0x1] }
 0x204   :  { %v380_v20 = vsub.f32 1.0, %v378_v15  ;;  %v379_v22 = vmul.f32 %v378_v15, %v376_v17  ;;  %v399_v32 = vsub.f32 1.0, %v397_v25  ;;  %v417_v40 = vunpack.c.l.bf16 %v416_v34  ;;  %v426_v41 = vld [vmem:[#allocation3 + $0x5] sm:$0x1]  ;;  %v446_v55 = vld [vmem:[#allocation3 + $0x7] sm:$0x1] }
 0x205   :  { %v389_v24 = vsub.f32 1.0, %v387_v18  ;;  %v409_v39 = vsub.f32 1.0, %v407_v33  ;;  %v427_v47 = vunpack.c.l.bf16 %v426_v41  ;;  %v437_v54 = vunpack.c.l.bf16 %v436_v48 }
 0x206   :  { %v382_v23 = vmul.f32 %v381_v21, %v380_v20  ;;  %v402_v38 = vmul.f32 %v401_v36, %v399_v32  ;;  %v419_v46 = vsub.f32 1.0, %v417_v40  ;;  %v447_v61 = vunpack.c.l.bf16 %v446_v55  ;;  %v519_v20 = vpop.permute.xlu1 %518 }
 0x207   :  { %v392_v31 = vmul.f32 %v391_v29, %v389_v24  ;;  %v412_v45 = vmul.f32 %v411_v43, %v409_v39  ;;  %v429_v53 = vsub.f32 1.0, %v427_v47  ;;  %v439_v60 = vsub.f32 1.0, %v437_v54 }
 0x208   :  { %v383_v28 = vadd.f32 %v382_v23, %v379_v22  ;;  %v422_v52 = vmul.f32 %v421_v50, %v419_v46  ;;  %v449_v3 = vsub.f32 1.0, %v447_v61 }
 0x209   :  { %v432_v59 = vmul.f32 %v431_v57, %v429_v53  ;;  %v442_v2 = vmul.f32 %v441_v63, %v439_v60  ;;  %v671_v57 = vld [vmem:[#allocation16] ss:$0 sm:$0xff] }
 0x20a   :  { %v388_v30 = vmul.f32 %v387_v18, %v383_v28  ;;  %384 = vst.msk [vmem:[#allocation2] sm:$0x3] %vm119_vm2, %v383_v28  ;;  %v452_v7 = vmul.f32 %v451_v5, %v449_v3 }
 0x20c   :  { %v393_v35 = vadd.f32 %v392_v31, %v388_v30  ;;  %v722_v30 = vld [vmem:[#allocation14 + $0x8] sm:$0xff]  }
 0x20e   :  { %v398_v37 = vmul.f32 %v397_v25, %v393_v35  ;;  %394 = vst.msk [vmem:[#allocation2 + $0x2] sm:$0x3] %vm119_vm2, %v393_v35 }
 0x210   :  { %v403_v42 = vadd.f32 %v402_v38, %v398_v37 }
 0x212   :  { %v408_v44 = vmul.f32 %v407_v33, %v403_v42  ;;  %404 = vst.msk [vmem:[#allocation2 + $0x4] sm:$0x3] %vm119_vm2, %v403_v42 }
 0x214   :  { %v413_v49 = vadd.f32 %v412_v45, %v408_v44 }
 0x216   :  { %v418_v51 = vmul.f32 %v417_v40, %v413_v49  ;;  %414 = vst.msk [vmem:[#allocation2 + $0x6] sm:$0x3] %vm119_vm2, %v413_v49 }
 0x218   :  { %v423_v56 = vadd.f32 %v422_v52, %v418_v51  ;;  %v670_v52 = vld [vmem:[#allocation13] ss:$0 sm:$0xff] }
 0x219   :  { %v736_v10 = vld.sshfl [vmem:[#allocation2] sm:$0xf pattern:$0x76325410] }
 0x21a   :  { %v428_v58 = vmul.f32 %v427_v47, %v423_v56  ;;  %424 = vst.msk [vmem:[#allocation2 + $0x8] sm:$0x3] %vm119_vm2, %v423_v56  ;;  %v669_v47 = vld [vmem:[#allocation11] ss:$0 sm:$0xff] }
 0x21c   :  { %v433_v62 = vadd.f32 %v432_v59, %v428_v58 }
 0x21d   :  { %v735_v9 = vld.sshfl [vmem:[#allocation2 + $0x2] sm:$0xf pattern:$0x76325410] }
 0x21e   :  { %v438_v1 = vmul.f32 %v437_v54, %v433_v62  ;;  %434 = vst.msk [vmem:[#allocation2 + $0xa] sm:$0x3] %vm119_vm2, %v433_v62  ;;  %v496_v13 = vcombine.low %v736_v10, %v735_v9 }
 0x220   :  { %v443_v4 = vadd.f32 %v442_v2, %v438_v1  ;;  %v503_v16 = vrot.slane %v496_v13, %v1100_v26 }
 0x222   :  { %v448_v6 = vmul.f32 %v447_v61, %v443_v4  ;;  %444 = vst.msk [vmem:[#allocation2 + $0xc] sm:$0x3] %vm119_vm2, %v443_v4 }
 0x224   :  { %v453_v8 = vadd.f32 %v452_v7, %v448_v6 }
 0x226   :  { %454 = vst.msk [vmem:[#allocation2 + $0xe] sm:$0x3] %vm119_vm2, %v453_v8  ;;  %455 = vst.msk [vmem:[#allocation4] sm:$0x3] %vm119_vm2, %v453_v8 }
 0x229   :  { %v737_v11 = vld.sshfl [vmem:[#allocation2 + $0x8] sm:$0xf pattern:$0x76325410] }
 0x22d   :  { %v738_v12 = vld.sshfl [vmem:[#allocation2 + $0xa] sm:$0xf pattern:$0x76325410] }
 0x22e   :  { %v504_v15 = vcombine.low %v737_v11, %v738_v12 }
 0x230   :  { %v511_v17 = vrot.slane %v504_v15, %v1100_v26  ;;  %v721_v26 = vld [vmem:[#allocation14] sm:$0xff]  }
 0x231   :  { %690 = vmatpush3.bf16.msra.mxu1 %v721_v26 }
 0x232   :  { %v512_v18 = vcombine.low %v503_v16, %v511_v17  ;;  %v513_v19 = vcombine.high %v503_v16, %v511_v17  ;;  %691 = vmatprep.subr.bf16.mxu1 %v934_v0 }
 0x234   :  { %v523_v21 = vmul.f32 %v519_v20, %v513_v19  ;;  %v522_v22 = vmul.f32 %v517_v14, %v512_v18 }
 0x235   :  { %692 = vmatpush3.bf16.msra.mxu1 %v722_v30 }
 0x236   :  { %v527_v23 = vsel %vm151_vm1, %v523_v21, 0.0  ;;  %v524_v24 = vsel %vm151_vm1, %v522_v22, 0.0  ;;  %v532_v25 = vmul.f32 %v522_v22, %v522_v22  ;;  %v533_v28 = vmul.f32 %v523_v21, %v523_v21 }
 0x237   :  { %528 = vadd.xlane.f32.xlu1 %v527_v23  ;;  %525 = vadd.xlane.f32.xlu0 %v524_v24 }
 0x238   :  { %v534_v27 = vsel %vm151_vm1, %v532_v25, 0.0  ;;  %v537_v29 = vsel %vm151_vm1, %v533_v28, 0.0 }
 0x23b   :  { %535 = vadd.xlane.f32.xlu0 %v534_v27 }
 0x23f   :  { %538 = vadd.xlane.f32.xlu0 %v537_v29 }
 0x2c4   :  { %v526_v31 = vpop.xlane.xlu0 %525  ;;  %v529_v33 = vpop.xlane.xlu1 %528 }
 0x2c5   :  { %v530_v32 = vmul.f32 0.03125, %v526_v31  ;;  %v531_v35 = vmul.f32 0.03125, %v529_v33 }
 0x2c7   :  { %v542_v36 = vmul.f32 %v530_v32, %v530_v32  ;;  %v543_v40 = vmul.f32 %v531_v35, %v531_v35  ;;  %v546_v45 = vsub.f32 %v522_v22, %v530_v32  ;;  %v547_v48 = vsub.f32 %v523_v21, %v531_v35 }
 0x2c8   :  { %v536_v34 = vpop.xlane.xlu0 %535 }
 0x2c9   :  { %v540_v37 = vmul.f32 0.03125, %v536_v34 }
 0x2cb   :  { %v544_v38 = vsub.f32 %v540_v37, %v542_v36 }
 0x2cc   :  { %v539_v39 = vpop.xlane.xlu0 %538 }
 0x2cd   :  { %v548_v41 = vadd.f32 1e-05, %v544_v38  ;;  %v541_v42 = vmul.f32 0.03125, %v539_v39 }
 0x2cf   :  { %731 = vrsqrt.f32 %v548_v41  ;;  %v545_v43 = vsub.f32 %v541_v42, %v543_v40 }
 0x2d1   :  { %v549_v44 = vadd.f32 1e-05, %v545_v43 }
 0x2d3   :  { %733 = vrsqrt.f32 %v549_v44 }
 0x2d9   :  { %v732_v46 = vpop.eup %731 }
 0x2da   :  { %v552_v0 = vmul.f32 %v732_v46, %v546_v45 }
 0x2dc   :  { %v561_v51 = vmul.f32 %v669_v47, %v552_v0 }
 0x2dd   :  { %v734_v49 = vpop.eup %733 }
 0x2de   :  { %v553_v50 = vmul.f32 %v734_v49, %v547_v48  ;;  %v570_v54 = vadd.f32 %v670_v52, %v561_v51 }
 0x2e0   :  { %v562_v53 = vmul.f32 %v669_v47, %v553_v50 }
 0x2e2   :  { %v571_v55 = vadd.f32 %v670_v52, %v562_v53 }
 0x2e4   :  { %v572_v56 = vpack.c.bf16 %v571_v55, %v570_v54 }
 0x2e6   :  { %694 = vmatmul.mubr.msk.bf16.vlgmr.msra.gmra.mrb[0].mxu1 %vm151_vm1, %v572_v56 }
 0x3b9   :  { %v633_v58 = vpop.f32.mrb[0].mxu1 }
 0x3ba   :  { %v634_v59 = vadd.f32 %v671_v57, %v633_v58  ;;  %v695_v60 = vpop.f32.mrb[1].mxu1 }
 0x3bb   :  { %v636_v61 = vpop.f32.mrb[2].mxu1 }
 0x3bc   :  { %640 = vst.msk [vmem:[#allocation17] sm:$0xff] %vm151_vm1, %v634_v59  ;;  %v637_v62 = vadd.f32 %v671_v57, %v636_v61  ;;  %v696_v63 = vpop.f32.mrb[3].mxu1 }
 0x3be   :  { %641 = vst.msk [vmem:[#allocation17 + $0x8] sm:$0xff] %vm151_vm1, %v637_v62 }
 0x3bf   :  { %904 = shalt.err (!%p901_p4)
}
 0x3c0   :  { %s905_s18 = scalar_lea.hbm %s1176_s7, 256 }
 0x3c1   :  { %p906_p5 = scmp.ne.s32.totalorder %s1176_s7, %s905_s18  ;;  %p909_p6 = scmp.lt.u32.totalorder %s905_s18, %s1176_s7 }
 0x3c3   :  { %p911_p7 = pnand %p909_p6, %p906_p5 }
 0x3c5   :  { %914 = shalt.err (!%p911_p7)
}
 0x3c6   :  { %s940_s23 = smov 128   ;;  %s941_s24 = smov 8  }
 0x3c7   :  { %653 = dma.vmem_to_hbm [thread:$0]  %s648_s0, 256, %s1176_s7, [#allocation7], %s940_s23, %s940_s23, %s941_s24  }
 0x3c8   :  { %923 = dma.done.wait [#allocation7], 256  }
 0x3c9   :  { %924 = vsyncadd [#allocation7], 4294967040 }
 0x3ca   :  { %657 = vsyncpa [#allocation6], 1 }
 0x3cb   :  { %658 = vsyncpa [#allocation9], 1 }
 0x3cc   :  { %659 = vsyncpa [#allocation12], 1 }
 0x3cd   :  { %660 = vsyncpa [#allocation15], 1 }
 0x3ce   :  { %661 = vsyncpa [#allocation7], 1 }

// kernel: tpu_custom_call.1
= control target key start
LH: loop header
LB: loop body
LE: loop exit
PB: predicated region body
PF: predicated region fallthrough
CT: control target
= control target key end

     0   :  { %12 = vsyncpa [#allocation6], 0  ;;  %s1169_s0 = inlined_call_operand.hbm [shape: bf16[2,8,32], index: 0, kind: input, shape index: {}]   ;;  %s1170_s1 = inlined_call_operand.hbm [shape: bf16[32,96], index: 1, kind: input, shape index: {}]   ;;  %s1171_s2 = inlined_call_operand.hbm [shape: f32[1,96], index: 2, kind: input, shape index: {}]   ;;  %s1172_s3 = inlined_call_operand.hbm [shape: f32[1,32], index: 3, kind: input, shape index: {}]   ;;  %s1173_s4 = inlined_call_operand.hbm [shape: f32[1,32], index: 4, kind: input, shape index: {}]   ;;  %s1174_s5 = inlined_call_operand.hbm [shape: bf16[32,32], index: 5, kind: input, shape index: {}]   ;;  %s1175_s6 = inlined_call_operand.hbm [shape: f32[1,32], index: 6, kind: input, shape index: {}]   ;;  %s1176_s7 = inlined_call_operand.hbm [shape: f32[2,8,32], index: 7, kind: output, shape index: {}]  }
   0x1   :  { %13 = vsyncpa [#allocation9], 0 }
   0x2   :  { %14 = vsyncpa [#allocation12], 0 }
   0x3   :  { %15 = vsyncpa [#allocation15], 0 }
   0x4   :  { %16 = vsyncpa [#allocation7], 0  ;;  %s925_s24 = smov [#allocation8]   ;;  %s926_s26 = smov [#allocation11]  }
   0x5   :  { %s34_s25 = sshll.u32 %s925_s24, 4  ;;  %s57_s27 = sshll.u32 %s926_s26, 4  ;;  %s35_s25 = int_to_ptr.vmem [resolvable:$true] %s34_s25  ;;  %s982_s27 = int_to_ptr.vmem [resolvable:$true] %s57_s27 }
   0x6   :  { %s739_s30 = scalar_lea.hbm %s1170_s1, 256 }
   0x7   :  { %p740_p0 = scmp.ne.s32.totalorder %s1170_s1, %s739_s30  ;;  %p743_p1 = scmp.lt.u32.totalorder %s739_s30, %s1170_s1 }
   0x9   :  { %p745_p2 = pnand %p743_p1, %p740_p0 }
   0xb   :  { %748 = shalt.err (!%p745_p2)
}
   0xc   :  { %s749_s12 = scalar_lea.vmem %s35_s25, 256  ;;  %p754_p4 = scmp.lt.s32.totalorder %s35_s25, %s35_s25 }
   0xd   :  { %p750_p3 = scmp.ne.s32.totalorder %s35_s25, %s749_s12  ;;  %p755_p5 = scmp.lt.s32.totalorder %s749_s12, %s749_s12 }
   0xf   :  { %p756_p6 = por %p755_p5, %p754_p4 }
  0x11   :  { %p757_p7 = pnand %p756_p6, %p750_p3 }
  0x13   :  { %760 = shalt.err (!%p757_p7)
}
  0x14   :  { %s927_s13 = smov 64   ;;  %s928_s14 = smov 4  }
  0x15   :  { %40 = dma.hbm_to_vmem [thread:$0]  %s1170_s1, 256, %s35_s25, [#allocation9], %s927_s13, %s927_s13, %s928_s14  }
  0x16   :  { %s761_s19 = scalar_lea.hbm %s1172_s3, 16 }
  0x17   :  { %p762_p8 = scmp.ne.s32.totalorder %s1172_s3, %s761_s19  ;;  %p765_p9 = scmp.lt.u32.totalorder %s761_s19, %s1172_s3 }
  0x19   :  { %p767_p10 = pnand %p765_p9, %p762_p8 }
  0x1b   :  { %770 = shalt.err (!%p767_p10)
}
  0x1c   :  { %s771_s24 = scalar_lea.vmem %s982_s27, 16  ;;  %s775_s1 = scalar_lea.vmem %s982_s27, 32 }
  0x1d   :  { %p772_p11 = scmp.ne.s32.totalorder %s982_s27, %s771_s24  ;;  %p776_p12 = scmp.lt.s32.totalorder %s982_s27, %s982_s27 }
  0x1e   :  { %p777_p13 = scmp.lt.s32.totalorder %s775_s1, %s771_s24 }
  0x20   :  { %p778_p0 = por %p777_p13, %p776_p12 }
  0x22   :  { %p779_p1 = pnand %p778_p0, %p772_p11 }
  0x24   :  { %782 = shalt.err (!%p779_p1)
}
  0x25   :  { %60 = dma.hbm_to_vmem [thread:$0]  %s1172_s3, 16, %s982_s27, [#allocation12]  }
  0x26   :  { %s929_s28 = smov [#allocation14]   ;;  %s930_s30 = smov [#allocation5]  }
  0x27   :  { %s76_s29 = sshll.u32 %s929_s28, 4  ;;  %s22_s8 = sshll.u32 %s930_s30, 4  ;;  %s77_s29 = int_to_ptr.vmem [resolvable:$true] %s76_s29  ;;  %s1017_s8 = int_to_ptr.vmem [resolvable:$true] %s22_s8 }
  0x28   :  { %s783_s11 = scalar_lea.hbm %s1174_s5, 256 }
  0x29   :  { %p784_p2 = scmp.ne.s32.totalorder %s1174_s5, %s783_s11  ;;  %p787_p3 = scmp.lt.u32.totalorder %s783_s11, %s1174_s5 }
  0x2b   :  { %p789_p4 = pnand %p787_p3, %p784_p2 }
  0x2d   :  { %792 = shalt.err (!%p789_p4)
}
  0x2e   :  { %s793_s3 = scalar_lea.vmem %s77_s29, 256  ;;  %p798_p6 = scmp.lt.s32.totalorder %s77_s29, %s77_s29 }
  0x2f   :  { %p794_p5 = scmp.ne.s32.totalorder %s77_s29, %s793_s3  ;;  %p799_p7 = scmp.lt.s32.totalorder %s793_s3, %s793_s3 }
  0x31   :  { %p800_p8 = por %p799_p7, %p798_p6 }
  0x33   :  { %p801_p9 = pnand %p800_p8, %p794_p5 }
  0x35   :  { %804 = shalt.err (!%p801_p9)
}
  0x36   :  { %82 = dma.hbm_to_vmem [thread:$0]  %s1174_s5, 256, %s77_s29, [#allocation15], %s927_s13, %s927_s13, %s928_s14  }
  0x37   :  { %s805_s21 = scalar_lea.hbm %s1169_s0, 128 }
  0x38   :  { %p806_p10 = scmp.ne.s32.totalorder %s1169_s0, %s805_s21  ;;  %p809_p11 = scmp.lt.u32.totalorder %s805_s21, %s1169_s0 }
  0x3a   :  { %p811_p12 = pnand %p809_p11, %p806_p10 }
  0x3c   :  { %814 = shalt.err (!%p811_p12)
}
  0x3d   :  { %s815_s25 = scalar_lea.vmem %s1017_s8, 128  ;;  %p820_p0 = scmp.lt.s32.totalorder %s1017_s8, %s1017_s8 }
  0x3e   :  { %p816_p13 = scmp.ne.s32.totalorder %s1017_s8, %s815_s25  ;;  %p821_p1 = scmp.lt.s32.totalorder %s815_s25, %s815_s25 }
  0x40   :  { %p822_p2 = por %p821_p1, %p820_p0 }
  0x42   :  { %p823_p3 = pnand %p822_p2, %p816_p13 }
  0x44   :  { %826 = shalt.err (!%p823_p3)
}
  0x45   :  { %28 = dma.hbm_to_vmem [thread:$0]  %s1169_s0, 128, %s1017_s8, [#allocation6], %s927_s13, %s927_s13, %s928_s14  }
  0x46   :  { %s931_s28 = smov [#allocation10]   ;;  %s932_s30 = smov [#allocation13]  }
  0x47   :  { %s47_s29 = sshll.u32 %s931_s28, 4  ;;  %s67_s9 = sshll.u32 %s932_s30, 4  ;;  %s48_s29 = int_to_ptr.vmem [resolvable:$true] %s47_s29  ;;  %s68_s9 = int_to_ptr.vmem [resolvable:$true] %s67_s9 }
  0x48   :  { %s827_s12 = scalar_lea.hbm %s1171_s2, 16 }
  0x49   :  { %p828_p4 = scmp.ne.s32.totalorder %s1171_s2, %s827_s12  ;;  %p831_p5 = scmp.lt.u32.totalorder %s827_s12, %s1171_s2 }
  0x4b   :  { %p833_p6 = pnand %p831_p5, %p828_p4 }
  0x4d   :  { %836 = shalt.err (!%p833_p6)
}
  0x4e   :  { %s837_s0 = scalar_lea.vmem %s48_s29, 16  ;;  %s841_s14 = scalar_lea.vmem %s48_s29, 32 }
  0x4f   :  { %p838_p7 = scmp.ne.s32.totalorder %s48_s29, %s837_s0  ;;  %p842_p8 = scmp.lt.s32.totalorder %s48_s29, %s48_s29 }
  0x50   :  { %p843_p9 = scmp.lt.s32.totalorder %s841_s14, %s837_s0 }
  0x52   :  { %p844_p10 = por %p843_p9, %p842_p8 }
  0x54   :  { %p845_p11 = pnand %p844_p10, %p838_p7 }
  0x56   :  { %848 = shalt.err (!%p845_p11)
}
  0x57   :  { %50 = dma.hbm_to_vmem [thread:$0]  %s1171_s2, 16, %s48_s29, [#allocation9]  }
  0x58   :  { %s849_s20 = scalar_lea.hbm %s1173_s4, 16 }
  0x59   :  { %p850_p12 = scmp.ne.s32.totalorder %s1173_s4, %s849_s20  ;;  %p853_p13 = scmp.lt.u32.totalorder %s849_s20, %s1173_s4 }
  0x5b   :  { %p855_p0 = pnand %p853_p13, %p850_p12 }
  0x5d   :  { %858 = shalt.err (!%p855_p0)
}
  0x5e   :  { %s859_s1 = scalar_lea.vmem %s68_s9, 16  ;;  %s863_s25 = scalar_lea.vmem %s68_s9, 32 }
  0x5f   :  { %p860_p1 = scmp.ne.s32.totalorder %s68_s9, %s859_s1  ;;  %p864_p2 = scmp.lt.s32.totalorder %s68_s9, %s68_s9 }
  0x60   :  { %p865_p3 = scmp.lt.s32.totalorder %s863_s25, %s859_s1 }
  0x62   :  { %p866_p4 = por %p865_p3, %p864_p2 }
  0x64   :  { %p867_p5 = pnand %p866_p4, %p860_p1 }
  0x66   :  { %870 = shalt.err (!%p867_p5)
}
  0x67   :  { %70 = dma.hbm_to_vmem [thread:$0]  %s1173_s4, 16, %s68_s9, [#allocation12]  }
  0x68   :  { %s933_s26 = smov [#allocation16]   ;;  %s871_s10 = scalar_lea.hbm %s1175_s6, 16 }
  0x69   :  { %s89_s28 = sshll.u32 %s933_s26, 4  ;;  %p872_p6 = scmp.ne.s32.totalorder %s1175_s6, %s871_s10  ;;  %s90_s28 = int_to_ptr.vmem [resolvable:$true] %s89_s28 }
  0x6a   :  { %p875_p7 = scmp.lt.u32.totalorder %s871_s10, %s1175_s6 }
  0x6c   :  { %p877_p8 = pnand %p875_p7, %p872_p6 }
  0x6e   :  { %880 = shalt.err (!%p877_p8)
}
  0x6f   :  { %s881_s17 = scalar_lea.vmem %s90_s28, 16  ;;  %s885_s4 = scalar_lea.vmem %s90_s28, 32 }
  0x70   :  { %p882_p9 = scmp.ne.s32.totalorder %s90_s28, %s881_s17  ;;  %p886_p10 = scmp.lt.s32.totalorder %s90_s28, %s90_s28 }
  0x71   :  { %p887_p11 = scmp.lt.s32.totalorder %s885_s4, %s881_s17 }
  0x73   :  { %p888_p12 = por %p887_p11, %p886_p10 }
  0x75   :  { %p889_p13 = pnand %p888_p12, %p882_p9 }
  0x77   :  { %892 = shalt.err (!%p889_p13)
}
  0x78   :  { %92 = dma.hbm_to_vmem [thread:$0]  %s1175_s6, 16, %s90_s28, [#allocation15]  }
  0x79   :  { %915 = dma.done.wait [#allocation6], 128  }
  0x7a   :  { %916 = vsyncadd [#allocation6], 4294967168 }
  0x7b   :  { %917 = dma.done.wait [#allocation9], 272  }
  0x7c   :  { %918 = vsyncadd [#allocation9], 4294967024 }
  0x7d   :  { %919 = dma.done.wait [#allocation12], 32  }
  0x7e   :  { %920 = vsyncadd [#allocation12], 4294967264 }
  0x7f   :  { %921 = dma.done.wait [#allocation15], 272  }
  0x80   :  { %922 = vsyncadd [#allocation15], 4294967024  ;;  %v934_v0 = vmov 0.0   ;;  %vm935_vm0 = vmmov 0   ;;  %v714_v1 = vld [vmem:[#allocation8] sm:$0xff]   ;;  %v715_v2 = vld [vmem:[#allocation8 + $0x8] sm:$0xff]   ;;  %v214_v6 = vlaneseq }
  0x81   :  { %681 = vmatprep.subr.bf16.mxu0 %v934_v0  ;;  %685 = vmatprep.mubr.msk.bf16.mxu0 %vm935_vm0, %v934_v0  ;;  %v716_v3 = vld [vmem:[#allocation5] sm:$0xff]   ;;  %vm151_vm1 = vcmask 261120   ;;  %vm119_vm2 = vcmask 254976   ;;  %v936_v4 = vmov 1983009808   ;;  %s938_s6 = smov 96  }
  0x82   :  { %689 = vmatprep.subr.bf16.mxu1 %v934_v0  ;;  %693 = vmatprep.mubr.msk.bf16.mxu1 %vm935_vm0, %v934_v0  ;;  %120 = vst.msk [vmem:[#allocation4] sm:$0x3] %vm119_vm2, %v934_v0  ;;  %v212_v5 = vunpack.c.l.s4 %v936_v4  ;;  %v662_v7 = vld [vmem:[#allocation10] ss:$0 sm:$0xff]  ;;  %v215_v9 = vshrl.u32 %v214_v6, 7  ;;  %vm367_vm3 = vcmask 253952  }
  0x83   :  { %682 = vmatpush3.bf16.msra.mxu0 %v714_v1  ;;  %v937_v10 = vmov 1934713408  }
  0x84   :  { %683 = vmatprep.subr.bf16.mxu0 %v934_v0  ;;  %v213_v8 = vunpack.c.0.s8 %v212_v5  ;;  %v243_v11 = vunpack.c.l.s4 %v937_v10 }
  0x86   :  { %v216_v15 = vsub.s32 %v213_v8, %v215_v9  ;;  %v244_v17 = vunpack.c.0.s8 %v243_v11 }
  0x87   :  { %684 = vmatpush3.bf16.msra.mxu0 %v715_v2 }
  0x88   :  { %v1100_v26 = vsub.s32 %v244_v17, %v215_v9 }
  0x89   :  { %v376_v17 = vld [vmem:[#allocation4] sm:$0x3] }
  0x8a   :  { %686 = vmatmul.mubr.msk.bf16.vlgmr.msra.gmra.mrb[0].mxu0 %vm151_vm1, %v716_v3 }
 0x15d   :  { %v189_v12 = vpop.f32.mrb[0].mxu0 }
 0x15e   :  { %v190_v13 = vadd.f32 %v662_v7, %v189_v12  ;;  %v687_v14 = vpop.f32.mrb[1].mxu0 }
 0x15f   :  { %v192_v16 = vpop.f32.mrb[2].mxu0 }
 0x160   :  { %v667_v18 = vmul.f32 -1.442695, %v190_v13  ;;  %v210_v19 = vcombine.high %v190_v13, %v934_v0  ;;  %v193_v20 = vadd.f32 %v662_v7, %v192_v16  ;;  %v688_v21 = vpop.f32.mrb[3].mxu0  ;;  %v217_v24 = vrot.slane %v190_v13, %v216_v15 }
 0x162   :  { %723 = vpow2.f32 %v667_v18  ;;  %v668_v22 = vmul.f32 -1.442695, %v193_v20  ;;  %v225_v23 = vcombine.high %v193_v20, %v934_v0  ;;  %v232_v25 = vrot.slane %v193_v20, %v216_v15 }
 0x163   :  { %v224_v27 = vrot.slane %v210_v19, %v216_v15 }
 0x164   :  { %725 = vpow2.f32 %v668_v22  ;;  %v239_v28 = vrot.slane %v225_v23, %v216_v15  ;;  %v240_v29 = vcombine.low %v217_v24, %v232_v25  ;;  %v241_v30 = vcombine.high %v217_v24, %v232_v25 }
 0x166   :  { %v256_v31 = vcombine.low %v224_v27, %v239_v28  ;;  %v257_v32 = vcombine.high %v224_v27, %v239_v28  ;;  %v248_v33 = vrot.slane %v240_v29, %v1100_v26  ;;  %v255_v34 = vrot.slane %v241_v30, %v1100_v26 }
 0x168   :  { %v264_v35 = vrot.slane %v256_v31, %v1100_v26  ;;  %v271_v36 = vrot.slane %v257_v32, %v1100_v26  ;;  %v272_v37 = vcombine.high %v248_v33, %v934_v0  ;;  %v273_v38 = vcombine.high %v255_v34, %v934_v0  ;;  %277 = vst.msk [vmem:[#allocation2] sm:$0x3] %vm119_vm2, %v248_v33 }
 0x169   :  { %279 = vst.msk [vmem:[#allocation2 + $0x4] sm:$0x3] %vm119_vm2, %v255_v34 }
 0x16a   :  { %v274_v39 = vcombine.high %v264_v35, %v934_v0  ;;  %v275_v40 = vcombine.high %v271_v36, %v934_v0  ;;  %281 = vst.msk [vmem:[#allocation2 + $0x8] sm:$0x3] %vm119_vm2, %v264_v35  ;;  %283 = vst.msk [vmem:[#allocation2 + $0xc] sm:$0x3] %vm119_vm2, %v271_v36 }
 0x16b   :  { %278 = vst.msk [vmem:[#allocation2 + $0x2] sm:$0x3] %vm119_vm2, %v272_v37  ;;  %280 = vst.msk [vmem:[#allocation2 + $0x6] sm:$0x3] %vm119_vm2, %v273_v38 }
 0x16c   :  { %v724_v41 = vpop.eup %723  ;;  %282 = vst.msk [vmem:[#allocation2 + $0xa] sm:$0x3] %vm119_vm2, %v274_v39  ;;  %284 = vst.msk [vmem:[#allocation2 + $0xe] sm:$0x3] %vm119_vm2, %v275_v40 }
 0x16d   :  { %v202_v42 = vadd.f32 1.0, %v724_v41 }
 0x16e   :  { %v726_v43 = vpop.eup %725 }
 0x16f   :  { %727 = vrcp.f32 %v202_v42  ;;  %v203_v44 = vadd.f32 1.0, %v726_v43  ;;  %v381_v21 = vld [vmem:[#allocation2] sm:$0x3] }
 0x170   :  { %v401_v36 = vld [vmem:[#allocation2 + $0x4] sm:$0x3] }
 0x171   :  { %729 = vrcp.f32 %v203_v44 }
 0x172   :  { %v391_v29 = vld [vmem:[#allocation2 + $0x2] sm:$0x3]  ;;  %v411_v43 = vld [vmem:[#allocation2 + $0x6] sm:$0x3] }
 0x179   :  { %v728_v45 = vpop.eup %727 }
 0x17a   :  { %287 = vrot.lane.b32.xlu0 %v728_v45, %s927_s13  ;;  %v208_v46 = vmul.f32 %v728_v45, %v190_v13 }
 0x17b   :  { %v730_v47 = vpop.eup %729 }
 0x17c   :  { %516 = vrot.lane.b32.xlu1 %v208_v46, %s938_s6  ;;  %v209_v48 = vmul.f32 %v730_v47, %v193_v20 }
 0x17e   :  { %289 = vrot.lane.b32.xlu0 %v730_v47, %s927_s13  ;;  %s939_s13 = smov [#allocation17]  }
 0x17f   :  { %s647_s0 = sshll.u32 %s939_s13, 4  ;;  %s648_s0 = int_to_ptr.vmem [resolvable:$true] %s647_s0 }
 0x180   :  { %518 = vrot.lane.b32.xlu1 %v209_v48, %s938_s6  ;;  %s893_s14 = scalar_lea.vmem %s648_s0, 256  ;;  %p898_p1 = scmp.lt.s32.totalorder %s648_s0, %s648_s0 }
 0x181   :  { %p894_p0 = scmp.ne.s32.totalorder %s648_s0, %s893_s14  ;;  %p899_p2 = scmp.lt.s32.totalorder %s893_s14, %s893_s14 }
 0x183   :  { %p900_p3 = por %p899_p2, %p898_p1 }
 0x185   :  { %p901_p4 = pnand %p900_p3, %p894_p0 }
 0x1ec   :  { %v288_v49 = vpop.permute.xlu0 %287 }
 0x1ed   :  { %v293_v50 = vcombine.high %v288_v49, %v934_v0  ;;  %v300_v52 = vrot.slane %v288_v49, %v216_v15 }
 0x1ef   :  { %v307_v55 = vrot.slane %v293_v50, %v216_v15  ;;  %v421_v50 = vld [vmem:[#allocation2 + $0x8] sm:$0x3] }
 0x1f0   :  { %v290_v51 = vpop.permute.xlu0 %289 }
 0x1f1   :  { %v308_v53 = vcombine.high %v290_v51, %v934_v0  ;;  %v315_v54 = vrot.slane %v290_v51, %v216_v15 }
 0x1f3   :  { %v322_v56 = vrot.slane %v308_v53, %v216_v15  ;;  %v323_v57 = vcombine.low %v300_v52, %v315_v54  ;;  %v324_v58 = vcombine.high %v300_v52, %v315_v54 }
 0x1f5   :  { %v331_v59 = vrot.slane %v323_v57, %v1100_v26  ;;  %v338_v60 = vrot.slane %v324_v58, %v1100_v26  ;;  %v339_v61 = vcombine.low %v307_v55, %v322_v56  ;;  %v340_v62 = vcombine.high %v307_v55, %v322_v56  ;;  %v431_v57 = vld [vmem:[#allocation2 + $0xa] sm:$0x3] }
 0x1f7   :  { %v347_v63 = vrot.slane %v339_v61, %v1100_v26  ;;  %v354_v1 = vrot.slane %v340_v62, %v1100_v26  ;;  %v355_v2 = vcombine.high %v331_v59, %v934_v0  ;;  %v356_v3 = vcombine.high %v338_v60, %v934_v0 }
 0x1f8   :  { %v359_v4 = vpack.c.bf16 %v331_v59, %v331_v59  ;;  %v361_v5 = vpack.c.bf16 %v338_v60, %v338_v60 }
 0x1f9   :  { %v357_v6 = vcombine.high %v347_v63, %v934_v0  ;;  %v358_v7 = vcombine.high %v354_v1, %v934_v0  ;;  %v360_v8 = vpack.c.bf16 %v355_v2, %v355_v2  ;;  %v362_v9 = vpack.c.bf16 %v356_v3, %v356_v3 }
 0x1fa   :  { %v363_v10 = vpack.c.bf16 %v347_v63, %v347_v63  ;;  %v365_v11 = vpack.c.bf16 %v354_v1, %v354_v1  ;;  %368 = vst.msk [vmem:[#allocation3] sm:$0x1] %vm367_vm3, %v359_v4  ;;  %370 = vst.msk [vmem:[#allocation3 + $0x2] sm:$0x1] %vm367_vm3, %v361_v5  ;;  %v441_v63 = vld [vmem:[#allocation2 + $0xc] sm:$0x3] }
 0x1fb   :  { %v364_v12 = vpack.c.bf16 %v357_v6, %v357_v6  ;;  %v366_v13 = vpack.c.bf16 %v358_v7, %v358_v7  ;;  %369 = vst.msk [vmem:[#allocation3 + $0x1] sm:$0x1] %vm367_vm3, %v360_v8  ;;  %371 = vst.msk [vmem:[#allocation3 + $0x3] sm:$0x1] %vm367_vm3, %v362_v9  ;;  %v451_v5 = vld [vmem:[#allocation2 + $0xe] sm:$0x3] }
 0x1fc   :  { %372 = vst.msk [vmem:[#allocation3 + $0x4] sm:$0x1] %vm367_vm3, %v363_v10  ;;  %374 = vst.msk [vmem:[#allocation3 + $0x6] sm:$0x1] %vm367_vm3, %v365_v11 }
 0x1fd   :  { %373 = vst.msk [vmem:[#allocation3 + $0x5] sm:$0x1] %vm367_vm3, %v364_v12  ;;  %375 = vst.msk [vmem:[#allocation3 + $0x7] sm:$0x1] %vm367_vm3, %v366_v13 }
 0x201   :  { %v377_v14 = vld [vmem:[#allocation3] sm:$0x1]  ;;  %v396_v19 = vld [vmem:[#allocation3 + $0x2] sm:$0x1] }
 0x202   :  { %v378_v15 = vunpack.c.l.bf16 %v377_v14  ;;  %v386_v16 = vld [vmem:[#allocation3 + $0x1] sm:$0x1]  ;;  %v397_v25 = vunpack.c.l.bf16 %v396_v19  ;;  %v406_v27 = vld [vmem:[#allocation3 + $0x3] sm:$0x1]  ;;  %v517_v14 = vpop.permute.xlu1 %516 }
 0x203   :  { %v387_v18 = vunpack.c.l.bf16 %v386_v16  ;;  %v407_v33 = vunpack.c.l.bf16 %v406_v27  ;;  %v416_v34 = vld [vmem:[#allocation3 + $0x4] sm:$0x1]  ;;  %v436_v48 = vld [vmem:[#allocation3 + $0x6] sm:$0x1] }
 0x204   :  { %v380_v20 = vsub.f32 1.0, %v378_v15  ;;  %v379_v22 = vmul.f32 %v378_v15, %v376_v17  ;;  %v399_v32 = vsub.f32 1.0, %v397_v25  ;;  %v417_v40 = vunpack.c.l.bf16 %v416_v34  ;;  %v426_v41 = vld [vmem:[#allocation3 + $0x5] sm:$0x1]  ;;  %v446_v55 = vld [vmem:[#allocation3 + $0x7] sm:$0x1] }
 0x205   :  { %v389_v24 = vsub.f32 1.0, %v387_v18  ;;  %v409_v39 = vsub.f32 1.0, %v407_v33  ;;  %v427_v47 = vunpack.c.l.bf16 %v426_v41  ;;  %v437_v54 = vunpack.c.l.bf16 %v436_v48 }
 0x206   :  { %v382_v23 = vmul.f32 %v381_v21, %v380_v20  ;;  %v402_v38 = vmul.f32 %v401_v36, %v399_v32  ;;  %v419_v46 = vsub.f32 1.0, %v417_v40  ;;  %v447_v61 = vunpack.c.l.bf16 %v446_v55  ;;  %v519_v20 = vpop.permute.xlu1 %518 }
 0x207   :  { %v392_v31 = vmul.f32 %v391_v29, %v389_v24  ;;  %v412_v45 = vmul.f32 %v411_v43, %v409_v39  ;;  %v429_v53 = vsub.f32 1.0, %v427_v47  ;;  %v439_v60 = vsub.f32 1.0, %v437_v54 }
 0x208   :  { %v383_v28 = vadd.f32 %v382_v23, %v379_v22  ;;  %v422_v52 = vmul.f32 %v421_v50, %v419_v46  ;;  %v449_v3 = vsub.f32 1.0, %v447_v61 }
 0x209   :  { %v432_v59 = vmul.f32 %v431_v57, %v429_v53  ;;  %v442_v2 = vmul.f32 %v441_v63, %v439_v60  ;;  %v671_v57 = vld [vmem:[#allocation16] ss:$0 sm:$0xff] }
 0x20a   :  { %v388_v30 = vmul.f32 %v387_v18, %v383_v28  ;;  %384 = vst.msk [vmem:[#allocation2] sm:$0x3] %vm119_vm2, %v383_v28  ;;  %v452_v7 = vmul.f32 %v451_v5, %v449_v3 }
 0x20c   :  { %v393_v35 = vadd.f32 %v392_v31, %v388_v30  ;;  %v722_v30 = vld [vmem:[#allocation14 + $0x8] sm:$0xff]  }
 0x20e   :  { %v398_v37 = vmul.f32 %v397_v25, %v393_v35  ;;  %394 = vst.msk [vmem:[#allocation2 + $0x2] sm:$0x3] %vm119_vm2, %v393_v35 }
 0x210   :  { %v403_v42 = vadd.f32 %v402_v38, %v398_v37 }
 0x212   :  { %v408_v44 = vmul.f32 %v407_v33, %v403_v42  ;;  %404 = vst.msk [vmem:[#allocation2 + $0x4] sm:$0x3] %vm119_vm2, %v403_v42 }
 0x214   :  { %v413_v49 = vadd.f32 %v412_v45, %v408_v44 }
 0x216   :  { %v418_v51 = vmul.f32 %v417_v40, %v413_v49  ;;  %414 = vst.msk [vmem:[#allocation2 + $0x6] sm:$0x3] %vm119_vm2, %v413_v49 }
 0x218   :  { %v423_v56 = vadd.f32 %v422_v52, %v418_v51  ;;  %v670_v52 = vld [vmem:[#allocation13] ss:$0 sm:$0xff] }
 0x219   :  { %v736_v10 = vld.sshfl [vmem:[#allocation2] sm:$0xf pattern:$0x76325410] }
 0x21a   :  { %v428_v58 = vmul.f32 %v427_v47, %v423_v56  ;;  %424 = vst.msk [vmem:[#allocation2 + $0x8] sm:$0x3] %vm119_vm2, %v423_v56  ;;  %v669_v47 = vld [vmem:[#allocation11] ss:$0 sm:$0xff] }
 0x21c   :  { %v433_v62 = vadd.f32 %v432_v59, %v428_v58 }
 0x21d   :  { %v735_v9 = vld.sshfl [vmem:[#allocation2 + $0x2] sm:$0xf pattern:$0x76325410] }
 0x21e   :  { %v438_v1 = vmul.f32 %v437_v54, %v433_v62  ;;  %434 = vst.msk [vmem:[#allocation2 + $0xa] sm:$0x3] %vm119_vm2, %v433_v62  ;;  %v496_v13 = vcombine.low %v736_v10, %v735_v9 }
 0x220   :  { %v443_v4 = vadd.f32 %v442_v2, %v438_v1  ;;  %v503_v16 = vrot.slane %v496_v13, %v1100_v26 }
 0x222   :  { %v448_v6 = vmul.f32 %v447_v61, %v443_v4  ;;  %444 = vst.msk [vmem:[#allocation2 + $0xc] sm:$0x3] %vm119_vm2, %v443_v4 }
 0x224   :  { %v453_v8 = vadd.f32 %v452_v7, %v448_v6 }
 0x226   :  { %454 = vst.msk [vmem:[#allocation2 + $0xe] sm:$0x3] %vm119_vm2, %v453_v8  ;;  %455 = vst.msk [vmem:[#allocation4] sm:$0x3] %vm119_vm2, %v453_v8 }
 0x229   :  { %v737_v11 = vld.sshfl [vmem:[#allocation2 + $0x8] sm:$0xf pattern:$0x76325410] }
 0x22d   :  { %v738_v12 = vld.sshfl [vmem:[#allocation2 + $0xa] sm:$0xf pattern:$0x76325410] }
 0x22e   :  { %v504_v15 = vcombine.low %v737_v11, %v738_v12 }
 0x230   :  { %v511_v17 = vrot.slane %v504_v15, %v1100_v26  ;;  %v721_v26 = vld [vmem:[#allocation14] sm:$0xff]  }
 0x231   :  { %690 = vmatpush3.bf16.msra.mxu1 %v721_v26 }
 0x232   :  { %v512_v18 = vcombine.low %v503_v16, %v511_v17  ;;  %v513_v19 = vcombine.high %v503_v16, %v511_v17  ;;  %691 = vmatprep.subr.bf16.mxu1 %v934_v0 }
 0x234   :  { %v523_v21 = vmul.f32 %v519_v20, %v513_v19  ;;  %v522_v22 = vmul.f32 %v517_v14, %v512_v18 }
 0x235   :  { %692 = vmatpush3.bf16.msra.mxu1 %v722_v30 }
 0x236   :  { %v527_v23 = vsel %vm151_vm1, %v523_v21, 0.0  ;;  %v524_v24 = vsel %vm151_vm1, %v522_v22, 0.0  ;;  %v532_v25 = vmul.f32 %v522_v22, %v522_v22  ;;  %v533_v28 = vmul.f32 %v523_v21, %v523_v21 }
 0x237   :  { %528 = vadd.xlane.f32.xlu1 %v527_v23  ;;  %525 = vadd.xlane.f32.xlu0 %v524_v24 }
 0x238   :  { %v534_v27 = vsel %vm151_vm1, %v532_v25, 0.0  ;;  %v537_v29 = vsel %vm151_vm1, %v533_v28, 0.0 }
 0x23b   :  { %535 = vadd.xlane.f32.xlu0 %v534_v27 }
 0x23f   :  { %538 = vadd.xlane.f32.xlu0 %v537_v29 }
 0x2c4   :  { %v526_v31 = vpop.xlane.xlu0 %525  ;;  %v529_v33 = vpop.xlane.xlu1 %528 }
 0x2c5   :  { %v530_v32 = vmul.f32 0.03125, %v526_v31  ;;  %v531_v35 = vmul.f32 0.03125, %v529_v33 }
 0x2c7   :  { %v542_v36 = vmul.f32 %v530_v32, %v530_v32  ;;  %v543_v40 = vmul.f32 %v531_v35, %v531_v35  ;;  %v546_v45 = vsub.f32 %v522_v22, %v530_v32  ;;  %v547_v48 = vsub.f32 %v523_v21, %v531_v35 }
 0x2c8   :  { %v536_v34 = vpop.xlane.xlu0 %535 }
 0x2c9   :  { %v540_v37 = vmul.f32 0.03125, %v536_v34 }
 0x2cb   :  { %v544_v38 = vsub.f32 %v540_v37, %v542_v36 }
 0x2cc   :  { %v539_v39 = vpop.xlane.xlu0 %538 }
 0x2cd   :  { %v548_v41 = vadd.f32 1e-05, %v544_v38  ;;  %v541_v42 = vmul.f32 0.03125, %v539_v39 }
 0x2cf   :  { %731 = vrsqrt.f32 %v548_v41  ;;  %v545_v43 = vsub.f32 %v541_v42, %v543_v40 }
 0x2d1   :  { %v549_v44 = vadd.f32 1e-05, %v545_v43 }
 0x2d3   :  { %733 = vrsqrt.f32 %v549_v44 }
 0x2d9   :  { %v732_v46 = vpop.eup %731 }
 0x2da   :  { %v552_v0 = vmul.f32 %v732_v46, %v546_v45 }
 0x2dc   :  { %v561_v51 = vmul.f32 %v669_v47, %v552_v0 }
 0x2dd   :  { %v734_v49 = vpop.eup %733 }
 0x2de   :  { %v553_v50 = vmul.f32 %v734_v49, %v547_v48  ;;  %v570_v54 = vadd.f32 %v670_v52, %v561_v51 }
 0x2e0   :  { %v562_v53 = vmul.f32 %v669_v47, %v553_v50 }
 0x2e2   :  { %v571_v55 = vadd.f32 %v670_v52, %v562_v53 }
 0x2e4   :  { %v572_v56 = vpack.c.bf16 %v571_v55, %v570_v54 }
 0x2e6   :  { %694 = vmatmul.mubr.msk.bf16.vlgmr.msra.gmra.mrb[0].mxu1 %vm151_vm1, %v572_v56 }
 0x3b9   :  { %v633_v58 = vpop.f32.mrb[0].mxu1 }
 0x3ba   :  { %v634_v59 = vadd.f32 %v671_v57, %v633_v58  ;;  %v695_v60 = vpop.f32.mrb[1].mxu1 }
 0x3bb   :  { %v636_v61 = vpop.f32.mrb[2].mxu1 }
 0x3bc   :  { %640 = vst.msk [vmem:[#allocation17] sm:$0xff] %vm151_vm1, %v634_v59  ;;  %v637_v62 = vadd.f32 %v671_v57, %v636_v61  ;;  %v696_v63 = vpop.f32.mrb[3].mxu1 }
 0x3be   :  { %641 = vst.msk [vmem:[#allocation17 + $0x8] sm:$0xff] %vm151_vm1, %v637_v62 }
 0x3bf   :  { %904 = shalt.err (!%p901_p4)
}
 0x3c0   :  { %s905_s18 = scalar_lea.hbm %s1176_s7, 256 }
 0x3c1   :  { %p906_p5 = scmp.ne.s32.totalorder %s1176_s7, %s905_s18  ;;  %p909_p6 = scmp.lt.u32.totalorder %s905_s18, %s1176_s7 }
 0x3c3   :  { %p911_p7 = pnand %p909_p6, %p906_p5 }
 0x3c5   :  { %914 = shalt.err (!%p911_p7)
}
 0x3c6   :  { %s940_s23 = smov 128   ;;  %s941_s24 = smov 8  }
 0x3c7   :  { %653 = dma.vmem_to_hbm [thread:$0]  %s648_s0, 256, %s1176_s7, [#allocation7], %s940_s23, %s940_s23, %s941_s24  }
 0x3c8   :  { %923 = dma.done.wait [#allocation7], 256  }
 0x3c9   :  { %924 = vsyncadd [#allocation7], 4294967040 }
 0x3ca   :  { %657 = vsyncpa [#allocation6], 1 }
 0x3cb   :  { %658 = vsyncpa [#allocation9], 1 }
 0x3cc   :  { %659 = vsyncpa [#allocation12], 1 }
 0x3cd   :  { %660 = vsyncpa [#allocation15], 1 }
 0x3ce   :  { %661 = vsyncpa [#allocation7], 1 }

</bundles_post_ra>
